<compile_context>
chip_gen: v5e
topology: v5e:2x2
jax: 0.10.0
libtpu: 0.0.40
codegen_flags: <defaults>
</compile_context>

<pallas_src>
import math
import functools

import jax
import jax.numpy as jnp
from jax import lax
from jax.experimental import pallas as pl
from jax.experimental.pallas import tpu as pltpu


# ---------------------------------------------------------------------------
# Fused MHA kernel: Bblk batch elements per grid step, all heads inside.
#   x_ref     : (Bblk, T, E)   input tokens for this batch block
#   w_in_ref  : (E, 3E)        pre-transposed in_proj weight (q cols pre-scaled)
#   b_in_ref  : (1, 3E)        in_proj bias (q part pre-scaled), f32
#   w_out_ref : (E, E)         pre-transposed out_proj weight
#   b_out_ref : (1, E)         out_proj bias, f32
#   out_ref   : (Bblk, T, E)   attention output
#   wts_ref   : (Bblk, T, S)   head-averaged attention weights (only if needed)
#   attn_sc   : (Bblk*T, E)    VMEM scratch slab for per-head outputs
# ---------------------------------------------------------------------------
def _fused_mha_kernel(x_ref, w_in_ref, b_in_ref, w_out_ref, b_out_ref,
                      out_ref, *rest, num_heads, head_dim, batch_block,
                      need_weights, matmul_dtype):
    if need_weights:
        wts_ref, attn_sc = rest
    else:
        (attn_sc,) = rest

    H, D, Bblk = num_heads, head_dim, batch_block
    E = H * D
    T = x_ref.shape[1]
    S = T                                                    # self-attention
    N = Bblk * T

    # ---- fused QKV in-projection: one big (N, E) x (E, 3E) matmul -----------
    # (q columns already scaled by D**-0.5 at prepare time.)
    x2d = x_ref[...].reshape(N, E).astype(matmul_dtype)
    qkv = jnp.dot(x2d, w_in_ref[...], preferred_element_type=jnp.float32)
    qkv = qkv + b_in_ref[...]                                # (N, 3E) f32
    qkv_m = qkv.astype(matmul_dtype)                         # hoisted cast

    if need_weights:
        w_sum = jnp.zeros((Bblk, T, S), jnp.float32)

    # ---- per-head attention, batched over the packed batch elements ---------
    for h in range(H):                                       # static unroll
        q_h = qkv_m[:, h * D:(h + 1) * D].reshape(Bblk, T, D)
        k_h = qkv_m[:, E + h * D:E + (h + 1) * D].reshape(Bblk, S, D)
        v_h = qkv_m[:, 2 * E + h * D:2 * E + (h + 1) * D].reshape(Bblk, S, D)

        # scores; each packed batch element only attends to itself
        s = jnp.einsum("btd,bsd->bts", q_h, k_h,
                       preferred_element_type=jnp.float32)   # (Bblk, T, S) f32

        # f32 softmax (v5e has no bf16 VPU/EUP)
        m = jnp.max(s, axis=-1, keepdims=True)
        p = jnp.exp(s - m)
        denom = jnp.sum(p, axis=-1, keepdims=True)
        if need_weights:
            # exact normalization: returned weights must sum to 1 per row
            p = p * (1.0 / denom)
            w_sum = w_sum + p
        else:
            # output-only path: EUP approximate reciprocal is free-ish
            p = p * pl.reciprocal(denom, approx=True)

        a_h = jnp.einsum("bts,bsd->btd", p.astype(matmul_dtype), v_h,
                         preferred_element_type=jnp.float32)  # (Bblk, T, D) f32

        # accumulate the head result at its static lane offset (no list/concat)
        attn_sc[:, h * D:(h + 1) * D] = (
            a_h.reshape(N, D).astype(matmul_dtype))

    if need_weights:
        wts_ref[...] = (w_sum * (1.0 / H)).astype(wts_ref.dtype)

    # ---- out-projection: one big lane-dense (N, E) x (E, E) matmul ----------
    y = jnp.dot(attn_sc[...], w_out_ref[...],
                preferred_element_type=jnp.float32) + b_out_ref[...]
    out_ref[...] = y.reshape(Bblk, T, E).astype(out_ref.dtype)


# ---------------------------------------------------------------------------
# Parameter init (mirrors reset_parameters: xavier_uniform + zero bias)
# ---------------------------------------------------------------------------
def init_params(key, embed_dim):
    k1, k2 = jax.random.split(key)

    def xavier(k, shape):
        fan_out, fan_in = shape
        bound = math.sqrt(6.0 / (fan_in + fan_out))
        return jax.random.uniform(k, shape, jnp.float32, -bound, bound)

    return {
        "in_proj_weight": xavier(k1, (3 * embed_dim, embed_dim)),   # (3E, E)
        "in_proj_bias": jnp.zeros((3 * embed_dim,), jnp.float32),
        "out_proj_weight": xavier(k2, (embed_dim, embed_dim)),      # (E, E)
        "out_proj_bias": jnp.zeros((embed_dim,), jnp.float32),
    }


# ---------------------------------------------------------------------------
# One-time parameter preparation: transpose weights for x @ W layout, fold the
# D**-0.5 q-scaling into the q columns, cast matmul operands to matmul_dtype.
# ---------------------------------------------------------------------------
def prepare_params(params, num_heads, matmul_dtype=jnp.bfloat16):
    E = params["out_proj_weight"].shape[0]
    D = E // num_heads
    scaling = D ** (-0.5)

    w_in = params["in_proj_weight"].T                         # (E, 3E)
    b_in = params["in_proj_bias"]                             # (3E,)
    col_scale = jnp.concatenate(
        [jnp.full((E,), scaling, jnp.float32), jnp.ones((2 * E,), jnp.float32)])
    w_in = w_in * col_scale[None, :]
    b_in = b_in * col_scale

    return {
        "w_in": w_in.astype(matmul_dtype),                                  # (E, 3E)
        "b_in": b_in.reshape(1, 3 * E).astype(jnp.float32),                 # (1, 3E)
        "w_out": params["out_proj_weight"].T.astype(matmul_dtype),          # (E, E)
        "b_out": params["out_proj_bias"].reshape(1, E).astype(jnp.float32), # (1, E)
    }


# ---------------------------------------------------------------------------
# Heuristics: batch-block size and VMEM budget
# ---------------------------------------------------------------------------
def _choose_batch_block(B, T, target_rows=256):
    """Largest batch block with Bblk*T <= target_rows that keeps >= 2 grid steps."""
    divisors = [d for d in range(1, B + 1) if B % d == 0]
    # keep >= 2 grid steps when B allows it (v7x 2-TC sharding + DMA overlap)
    cands = [d for d in divisors if B // d >= 2] or divisors
    good = [d for d in cands if d * T <= target_rows]
    return max(good) if good else min(cands)


def _vmem_budget_bytes(estimated_need):
    # Default cap is safe on v7x (64 MiB physical VMEM per TC); widen on the
    # 128 MiB parts when the capacity can be queried.
    cap = 40 * 1024 * 1024
    try:
        cap = max(cap, (int(pltpu.get_tpu_info().vmem_capacity_bytes) * 3) // 4)
    except Exception:
        pass
    return int(min(max(estimated_need, 16 * 1024 * 1024), cap))


# ---------------------------------------------------------------------------
# Forward pass (self-attention: query is key is value), dropout = 0.0
#   query: (T, B, E)  ->  (attn: (T, B, E), weights: (B, T, T) or None)
# ---------------------------------------------------------------------------
def multihead_attention(query, prep, num_heads, matmul_dtype=jnp.bfloat16,
                        need_weights=True, batch_block=None):
    T, B, E = query.shape
    D = E // num_heads
    Bblk = batch_block if batch_block is not None else _choose_batch_block(B, T)
    assert B % Bblk == 0
    grid = (B // Bblk,)

    # TODO(synk): when B % 8 == 0 the (T,B,E)<->(B,T,E) transposes could be
    # replaced by a (T, 8, E) block on the original layout + in-kernel shuffle;
    # at small B the wrapper transpose is required by the (8,128) rule.
    x_bte = jnp.transpose(query, (1, 0, 2))                   # (B, T, E)

    kernel = functools.partial(
        _fused_mha_kernel, num_heads=num_heads, head_dim=D, batch_block=Bblk,
        need_weights=need_weights, matmul_dtype=matmul_dtype)

    if need_weights:
        out_shape = (jax.ShapeDtypeStruct((B, T, E), query.dtype),
                     jax.ShapeDtypeStruct((B, T, T), jnp.float32))
        out_specs = (pl.BlockSpec((Bblk, T, E), lambda b: (b, 0, 0)),
                     pl.BlockSpec((Bblk, T, T), lambda b: (b, 0, 0)))
    else:
        out_shape = jax.ShapeDtypeStruct((B, T, E), query.dtype)
        out_specs = pl.BlockSpec((Bblk, T, E), lambda b: (b, 0, 0))

    # Rough VMEM need: double-buffered x/out/weights blocks + resident
    # projection weights + scratch slab + margin for qkv/score temporaries.
    in_b = jnp.dtype(query.dtype).itemsize
    mm_b = jnp.dtype(matmul_dtype).itemsize
    est = (2 * Bblk * T * E * in_b                       # x blocks
           + 2 * Bblk * T * E * in_b                     # out blocks
           + (2 * Bblk * T * T * 4 if need_weights else 0)
           + 2 * (3 * E * E + 3 * E + E * E + E) * mm_b  # projections (<=2 bufs)
           + Bblk * T * E * mm_b                         # attn scratch slab
           + 6 * Bblk * T * (3 * E + T) * 4)             # in-kernel temporaries
    vmem_limit = _vmem_budget_bytes(est)

    def build(single_buffer_weights):
        if single_buffer_weights:
            # resident operands never change block index -> single-buffer them
            # (halves their VMEM footprint; most valuable on v7x's 64 MiB VMEM)
            def wspec(shape):
                return pl.BlockSpec(shape, lambda b: (0,) * len(shape),
                                    pipeline_mode=pl.Buffered(1))
        else:
            def wspec(shape):
                return pl.BlockSpec(shape, lambda b: (0,) * len(shape))

        return pl.pallas_call(
            kernel,
            out_shape=out_shape,
            grid=grid,
            in_specs=[
                pl.BlockSpec((Bblk, T, E), lambda b: (b, 0, 0)),   # x (per block)
                wspec((E, 3 * E)),                                 # w_in  (resident)
                wspec((1, 3 * E)),                                 # b_in  (resident)
                wspec((E, E)),                                     # w_out (resident)
                wspec((1, E)),                                     # b_out (resident)
            ],
            out_specs=out_specs,
            scratch_shapes=[pltpu.VMEM((Bblk * T, E), matmul_dtype)],
            compiler_params=pltpu.CompilerParams(
                dimension_semantics=("parallel",),
                vmem_limit_bytes=vmem_limit,
            ),
        )

    args = (x_bte, prep["w_in"], prep["b_in"], prep["w_out"], prep["b_out"])
    try:
        results = jax.block_until_ready(build(True)(*args))
    except Exception:
        # pipeline_mode=pl.Buffered(1) not supported in this jax build:
        # fall back to default double buffering (semantics identical).
        results = build(False)(*args)

    if need_weights:
        out_bte, wts = results
    else:
        out_bte, wts = results, None

    attn = jnp.transpose(out_bte, (1, 0, 2))                    # (T, B, E)
    return attn, wts


# ---------------------------------------------------------------------------
# References
# ---------------------------------------------------------------------------
def reference_torch_style(query, params, num_heads):
    """Pure-JAX, genuine-f32 mirror of the PyTorch forward (raw parameters)."""
    with jax.default_matmul_precision("highest"):
        T, B, E = query.shape
        H = num_heads
        D = E // H
        scaling = D ** (-0.5)
        qkv = (query.reshape(T * B, E) @ params["in_proj_weight"].T
               + params["in_proj_bias"])
        q2d, k2d, v2d = jnp.split(qkv, 3, axis=-1)
        q = q2d.reshape(T, B * H, D).transpose(1, 0, 2) * scaling
        k = k2d.reshape(T, B * H, D).transpose(1, 0, 2)
        v = v2d.reshape(T, B * H, D).transpose(1, 0, 2)
        s = jnp.einsum("btd,bsd->bts", q, k)
        p = jax.nn.softmax(s, axis=-1)
        a = jnp.einsum("bts,bsd->btd", p, v)
        a = a.transpose(1, 0, 2).reshape(T, B, E)
        out = (a.reshape(T * B, E) @ params["out_proj_weight"].T
               + params["out_proj_bias"])
        return out.reshape(T, B, E), p.reshape(B, H, T, T).sum(axis=1) / H


def reference_prepared(query, prep, num_heads, matmul_dtype):
    """Pure-JAX mirror of the kernel's mixed-precision recipe (same casts)."""
    T, B, E = query.shape
    H = num_heads
    D = E // H
    x = jnp.transpose(query, (1, 0, 2)).astype(matmul_dtype)          # (B, T, E)
    qkv = jnp.einsum("bte,ef->btf", x, prep["w_in"],
                     preferred_element_type=jnp.float32) + prep["b_in"][None]
    qkv = qkv.astype(matmul_dtype)
    q = qkv[..., :E].reshape(B, T, H, D).transpose(0, 2, 1, 3)
    k = qkv[..., E:2 * E].reshape(B, T, H, D).transpose(0, 2, 1, 3)
    v = qkv[..., 2 * E:].reshape(B, T, H, D).transpose(0, 2, 1, 3)
    s = jnp.einsum("bhtd,bhsd->bhts", q, k, preferred_element_type=jnp.float32)
    p = jax.nn.softmax(s, axis=-1)
    a = jnp.einsum("bhts,bhsd->bhtd", p.astype(matmul_dtype), v,
                   preferred_element_type=jnp.float32)
    a = a.transpose(0, 2, 1, 3).reshape(B, T, E).astype(matmul_dtype)
    y = jnp.einsum("bte,ef->btf", a, prep["w_out"],
                   preferred_element_type=jnp.float32) + prep["b_out"][None]
    return jnp.transpose(y, (1, 0, 2)).astype(query.dtype), p.sum(axis=1) / H


if __name__ == "__main__":
    H, E = 4, 32                       # embed_dim=32, heads=4 (head_dim=8)
    root = jax.random.PRNGKey(0)
    kx, kp, kx2 = jax.random.split(root, 3)
    params = init_params(kp, E)

    # ---- config 1: module-default small shape (seq=8, batch=2) --------------
    T, B = 8, 2
    x = jax.random.normal(kx, (T, B, E), jnp.float32)
    ref_attn, ref_w = reference_torch_style(x, params, H)

    # f32 matmul path vs. genuine-f32 torch-style reference
    prep32 = prepare_params(params, H, jnp.float32)
    attn32, w32 = multihead_attention(x, prep32, H, jnp.float32)
    attn32, w32 = jax.block_until_ready((attn32, w32))
    assert attn32.shape == (T, B, E) and w32.shape == (B, T, T)
    assert jnp.allclose(attn32, ref_attn, atol=1e-2, rtol=1e-2)
    assert jnp.allclose(w32, ref_w, atol=1e-2, rtol=1e-2)
    # returned attention weights are exactly normalized (rows sum to 1)
    assert jnp.allclose(jnp.sum(w32, axis=-1), 1.0, atol=1e-5)

    # bf16 matmul path (default perf config) vs. same-recipe reference
    prep_bf = prepare_params(params, H, jnp.bfloat16)
    attn_bf, w_bf = multihead_attention(x, prep_bf, H, jnp.bfloat16)
    attn_bf, w_bf = jax.block_until_ready((attn_bf, w_bf))
    ref_attn_bf, ref_w_bf = reference_prepared(x, prep_bf, H, jnp.bfloat16)
    assert jnp.allclose(attn_bf, ref_attn_bf, atol=2e-2, rtol=2e-2)
    assert jnp.allclose(w_bf, ref_w_bf, atol=2e-2, rtol=2e-2)
    assert jnp.allclose(attn_bf, ref_attn, atol=5e-2, rtol=5e-2)

    # need_weights=False fast path (no (B,T,S) HBM stream, approx reciprocal)
    attn_nw, w_none = multihead_attention(x, prep_bf, H, jnp.bfloat16,
                                          need_weights=False)
    attn_nw = jax.block_until_ready(attn_nw)
    assert w_none is None
    assert jnp.allclose(attn_nw, ref_attn, atol=5e-2, rtol=5e-2)

    # ---- config 2: larger batch exercises batch packing (Bblk > 1) ----------
    T2, B2 = 8, 8
    x2 = jax.random.normal(kx2, (T2, B2, E), jnp.float32)
    ref2_attn, ref2_w = reference_torch_style(x2, params, H)
    attn2, w2 = multihead_attention(x2, prep_bf, H, jnp.bfloat16)
    attn2, w2 = jax.block_until_ready((attn2, w2))
    assert attn2.shape == (T2, B2, E) and w2.shape == (B2, T2, T2)
    assert jnp.allclose(attn2, ref2_attn, atol=5e-2, rtol=5e-2)
    assert jnp.allclose(w2, ref2_w, atol=2e-2, rtol=2e-2)

    print("KERNEL_OK")
</pallas_src>

<mosaic_0001>
module attributes {stable_mosaic.version = 11 : i64} {
  func.func @_fused_mha_kernel(%arg0: i32, %arg1: memref<1x8x32xf32, #tpu.memory_space<vmem>>, %arg2: memref<32x96xf32, #tpu.memory_space<vmem>>, %arg3: memref<1x96xf32, #tpu.memory_space<vmem>>, %arg4: memref<32x32xf32, #tpu.memory_space<vmem>>, %arg5: memref<1x32xf32, #tpu.memory_space<vmem>>, %arg6: memref<1x8x32xf32, #tpu.memory_space<vmem>>, %arg7: memref<1x8x8xf32, #tpu.memory_space<vmem>>, %arg8: memref<8x32xf32, #tpu.memory_space<vmem>>) attributes {dimension_semantics = [#tpu.dimension_semantics<parallel>], iteration_bounds = array<i64: 2>, scalar_prefetch = 0 : i64, scratch_operands = 1 : i64, tpu.core_type = #tpu.core_type<tc>, window_params = [{transform_indices = @transform_0, window_bounds = array<i64: 1, 8, 32>}, {pipeline_mode = #tpu.pipeline_mode<synchronous>, transform_indices = @transform_1, window_bounds = array<i64: 32, 96>}, {pipeline_mode = #tpu.pipeline_mode<synchronous>, transform_indices = @transform_2, window_bounds = array<i64: 1, 96>}, {pipeline_mode = #tpu.pipeline_mode<synchronous>, transform_indices = @transform_3, window_bounds = array<i64: 32, 32>}, {pipeline_mode = #tpu.pipeline_mode<synchronous>, transform_indices = @transform_4, window_bounds = array<i64: 1, 32>}, {transform_indices = @transform_5, window_bounds = array<i64: 1, 8, 32>}, {transform_indices = @transform_6, window_bounds = array<i64: 1, 8, 8>}]} {
    %c0 = arith.constant 0 : index
    %c0_0 = arith.constant 0 : index
    %c0_1 = arith.constant 0 : index
    %0 = vector.load %arg1[%c0, %c0_0, %c0_1] : memref<1x8x32xf32, #tpu.memory_space<vmem>>, vector<1x8x32xf32>
    %1 = vector.shape_cast %0 : vector<1x8x32xf32> to vector<8x32xf32>
    %c0_2 = arith.constant 0 : index
    %c0_3 = arith.constant 0 : index
    %2 = vector.load %arg2[%c0_2, %c0_3] : memref<32x96xf32, #tpu.memory_space<vmem>>, vector<32x96xf32>
    %cst = arith.constant dense<0.000000e+00> : vector<8x96xf32>
    %3 = tpu.matmul %1, %2, %cst {dimension_numbers = #tpu.dot_dimension_numbers<[1], [0], [0], [1], [0, 0, 1, 1], [], []>} : vector<8x32xf32>, vector<32x96xf32>, vector<8x96xf32> -> vector<8x96xf32>
    %c0_4 = arith.constant 0 : index
    %c0_5 = arith.constant 0 : index
    %4 = vector.load %arg3[%c0_4, %c0_5] : memref<1x96xf32, #tpu.memory_space<vmem>>, vector<1x96xf32>
    %5 = vector.broadcast %4 : vector<1x96xf32> to vector<8x96xf32>
    %6 = arith.addf %3, %5 : vector<8x96xf32>
    %cst_6 = arith.constant 0.000000e+00 : f32
    %7 = vector.broadcast %cst_6 : f32 to vector<1x8x8xf32>
    %8 = vector.extract_strided_slice %6 {offsets = [0, 0], sizes = [8, 8], strides = [1, 1]} : vector<8x96xf32> to vector<8x8xf32>
    %9 = vector.shape_cast %8 : vector<8x8xf32> to vector<1x8x8xf32>
    %10 = vector.extract_strided_slice %6 {offsets = [0, 32], sizes = [8, 8], strides = [1, 1]} : vector<8x96xf32> to vector<8x8xf32>
    %11 = vector.shape_cast %10 : vector<8x8xf32> to vector<1x8x8xf32>
    %12 = vector.extract_strided_slice %6 {offsets = [0, 64], sizes = [8, 8], strides = [1, 1]} : vector<8x96xf32> to vector<8x8xf32>
    %13 = vector.shape_cast %12 : vector<8x8xf32> to vector<1x8x8xf32>
    "tpu.trace_start"() <{level = 10 : i32, message = "btd,bsd->bts"}> : () -> ()
    %cst_7 = arith.constant dense<0.000000e+00> : vector<1x8x8xf32>
    %14 = tpu.matmul %9, %11, %cst_7 {dimension_numbers = #tpu.dot_dimension_numbers<[2], [2], [1], [1], [0, 0, 0, 1, 1, 1], [0], [0]>} : vector<1x8x8xf32>, vector<1x8x8xf32>, vector<1x8x8xf32> -> vector<1x8x8xf32>
    "tpu.trace_stop"() : () -> ()
    %cst_8 = arith.constant dense<0xFF800000> : vector<1x8xf32>
    %15 = vector.multi_reduction <maximumf>, %14, %cst_8 [2] : vector<1x8x8xf32> to vector<1x8xf32>
    %16 = vector.shape_cast %15 : vector<1x8xf32> to vector<1x8x1xf32>
    %17 = vector.broadcast %16 : vector<1x8x1xf32> to vector<1x8x8xf32>
    %18 = arith.subf %14, %17 : vector<1x8x8xf32>
    %19 = math.exp %18 : vector<1x8x8xf32>
    %cst_9 = arith.constant dense<0.000000e+00> : vector<1x8xf32>
    %20 = vector.multi_reduction <add>, %19, %cst_9 [2] : vector<1x8x8xf32> to vector<1x8xf32>
    %21 = vector.shape_cast %20 : vector<1x8xf32> to vector<1x8x1xf32>
    %cst_10 = arith.constant 1.000000e+00 : f32
    %22 = vector.broadcast %cst_10 : f32 to vector<1x8x1xf32>
    %23 = arith.divf %22, %21 : vector<1x8x1xf32>
    %24 = vector.broadcast %23 : vector<1x8x1xf32> to vector<1x8x8xf32>
    %25 = arith.mulf %19, %24 : vector<1x8x8xf32>
    %26 = arith.addf %7, %25 : vector<1x8x8xf32>
    "tpu.trace_start"() <{level = 10 : i32, message = "bts,bsd->btd"}> : () -> ()
    %cst_11 = arith.constant dense<0.000000e+00> : vector<1x8x8xf32>
    %27 = tpu.matmul %25, %13, %cst_11 {dimension_numbers = #tpu.dot_dimension_numbers<[2], [1], [1], [2], [0, 0, 0, 1, 1, 2], [0], [0]>} : vector<1x8x8xf32>, vector<1x8x8xf32>, vector<1x8x8xf32> -> vector<1x8x8xf32>
    "tpu.trace_stop"() : () -> ()
    %28 = vector.shape_cast %27 : vector<1x8x8xf32> to vector<8x8xf32>
    %c0_12 = arith.constant 0 : index
    %c0_13 = arith.constant 0 : index
    %29 = vector.load %arg8[%c0_12, %c0_13] : memref<8x32xf32, #tpu.memory_space<vmem>>, vector<8x8xf32>
    tpu.vector_store %arg8[%c0_12, %c0_13], %28 {strides = array<i32>} : memref<8x32xf32, #tpu.memory_space<vmem>>, vector<8x8xf32>,
    %30 = vector.extract_strided_slice %6 {offsets = [0, 8], sizes = [8, 8], strides = [1, 1]} : vector<8x96xf32> to vector<8x8xf32>
    %31 = vector.shape_cast %30 : vector<8x8xf32> to vector<1x8x8xf32>
    %32 = vector.extract_strided_slice %6 {offsets = [0, 40], sizes = [8, 8], strides = [1, 1]} : vector<8x96xf32> to vector<8x8xf32>
    %33 = vector.shape_cast %32 : vector<8x8xf32> to vector<1x8x8xf32>
    %34 = vector.extract_strided_slice %6 {offsets = [0, 72], sizes = [8, 8], strides = [1, 1]} : vector<8x96xf32> to vector<8x8xf32>
    %35 = vector.shape_cast %34 : vector<8x8xf32> to vector<1x8x8xf32>
    "tpu.trace_start"() <{level = 10 : i32, message = "btd,bsd->bts"}> : () -> ()
    %cst_14 = arith.constant dense<0.000000e+00> : vector<1x8x8xf32>
    %36 = tpu.matmul %31, %33, %cst_14 {dimension_numbers = #tpu.dot_dimension_numbers<[2], [2], [1], [1], [0, 0, 0, 1, 1, 1], [0], [0]>} : vector<1x8x8xf32>, vector<1x8x8xf32>, vector<1x8x8xf32> -> vector<1x8x8xf32>
    "tpu.trace_stop"() : () -> ()
    %cst_15 = arith.constant dense<0xFF800000> : vector<1x8xf32>
    %37 = vector.multi_reduction <maximumf>, %36, %cst_15 [2] : vector<1x8x8xf32> to vector<1x8xf32>
    %38 = vector.shape_cast %37 : vector<1x8xf32> to vector<1x8x1xf32>
    %39 = vector.broadcast %38 : vector<1x8x1xf32> to vector<1x8x8xf32>
    %40 = arith.subf %36, %39 : vector<1x8x8xf32>
    %41 = math.exp %40 : vector<1x8x8xf32>
    %cst_16 = arith.constant dense<0.000000e+00> : vector<1x8xf32>
    %42 = vector.multi_reduction <add>, %41, %cst_16 [2] : vector<1x8x8xf32> to vector<1x8xf32>
    %43 = vector.shape_cast %42 : vector<1x8xf32> to vector<1x8x1xf32>
    %cst_17 = arith.constant 1.000000e+00 : f32
    %44 = vector.broadcast %cst_17 : f32 to vector<1x8x1xf32>
    %45 = arith.divf %44, %43 : vector<1x8x1xf32>
    %46 = vector.broadcast %45 : vector<1x8x1xf32> to vector<1x8x8xf32>
    %47 = arith.mulf %41, %46 : vector<1x8x8xf32>
    %48 = arith.addf %26, %47 : vector<1x8x8xf32>
    "tpu.trace_start"() <{level = 10 : i32, message = "bts,bsd->btd"}> : () -> ()
    %cst_18 = arith.constant dense<0.000000e+00> : vector<1x8x8xf32>
    %49 = tpu.matmul %47, %35, %cst_18 {dimension_numbers = #tpu.dot_dimension_numbers<[2], [1], [1], [2], [0, 0, 0, 1, 1, 2], [0], [0]>} : vector<1x8x8xf32>, vector<1x8x8xf32>, vector<1x8x8xf32> -> vector<1x8x8xf32>
    "tpu.trace_stop"() : () -> ()
    %50 = vector.shape_cast %49 : vector<1x8x8xf32> to vector<8x8xf32>
    %c0_19 = arith.constant 0 : index
    %c8 = arith.constant 8 : index
    %51 = vector.load %arg8[%c0_19, %c8] : memref<8x32xf32, #tpu.memory_space<vmem>>, vector<8x8xf32>
    tpu.vector_store %arg8[%c0_19, %c8], %50 {strides = array<i32>} : memref<8x32xf32, #tpu.memory_space<vmem>>, vector<8x8xf32>,
    %52 = vector.extract_strided_slice %6 {offsets = [0, 16], sizes = [8, 8], strides = [1, 1]} : vector<8x96xf32> to vector<8x8xf32>
    %53 = vector.shape_cast %52 : vector<8x8xf32> to vector<1x8x8xf32>
    %54 = vector.extract_strided_slice %6 {offsets = [0, 48], sizes = [8, 8], strides = [1, 1]} : vector<8x96xf32> to vector<8x8xf32>
    %55 = vector.shape_cast %54 : vector<8x8xf32> to vector<1x8x8xf32>
    %56 = vector.extract_strided_slice %6 {offsets = [0, 80], sizes = [8, 8], strides = [1, 1]} : vector<8x96xf32> to vector<8x8xf32>
    %57 = vector.shape_cast %56 : vector<8x8xf32> to vector<1x8x8xf32>
    "tpu.trace_start"() <{level = 10 : i32, message = "btd,bsd->bts"}> : () -> ()
    %cst_20 = arith.constant dense<0.000000e+00> : vector<1x8x8xf32>
    %58 = tpu.matmul %53, %55, %cst_20 {dimension_numbers = #tpu.dot_dimension_numbers<[2], [2], [1], [1], [0, 0, 0, 1, 1, 1], [0], [0]>} : vector<1x8x8xf32>, vector<1x8x8xf32>, vector<1x8x8xf32> -> vector<1x8x8xf32>
    "tpu.trace_stop"() : () -> ()
    %cst_21 = arith.constant dense<0xFF800000> : vector<1x8xf32>
    %59 = vector.multi_reduction <maximumf>, %58, %cst_21 [2] : vector<1x8x8xf32> to vector<1x8xf32>
    %60 = vector.shape_cast %59 : vector<1x8xf32> to vector<1x8x1xf32>
    %61 = vector.broadcast %60 : vector<1x8x1xf32> to vector<1x8x8xf32>
    %62 = arith.subf %58, %61 : vector<1x8x8xf32>
    %63 = math.exp %62 : vector<1x8x8xf32>
    %cst_22 = arith.constant dense<0.000000e+00> : vector<1x8xf32>
    %64 = vector.multi_reduction <add>, %63, %cst_22 [2] : vector<1x8x8xf32> to vector<1x8xf32>
    %65 = vector.shape_cast %64 : vector<1x8xf32> to vector<1x8x1xf32>
    %cst_23 = arith.constant 1.000000e+00 : f32
    %66 = vector.broadcast %cst_23 : f32 to vector<1x8x1xf32>
    %67 = arith.divf %66, %65 : vector<1x8x1xf32>
    %68 = vector.broadcast %67 : vector<1x8x1xf32> to vector<1x8x8xf32>
    %69 = arith.mulf %63, %68 : vector<1x8x8xf32>
    %70 = arith.addf %48, %69 : vector<1x8x8xf32>
    "tpu.trace_start"() <{level = 10 : i32, message = "bts,bsd->btd"}> : () -> ()
    %cst_24 = arith.constant dense<0.000000e+00> : vector<1x8x8xf32>
    %71 = tpu.matmul %69, %57, %cst_24 {dimension_numbers = #tpu.dot_dimension_numbers<[2], [1], [1], [2], [0, 0, 0, 1, 1, 2], [0], [0]>} : vector<1x8x8xf32>, vector<1x8x8xf32>, vector<1x8x8xf32> -> vector<1x8x8xf32>
    "tpu.trace_stop"() : () -> ()
    %72 = vector.shape_cast %71 : vector<1x8x8xf32> to vector<8x8xf32>
    %c0_25 = arith.constant 0 : index
    %c16 = arith.constant 16 : index
    %73 = vector.load %arg8[%c0_25, %c16] : memref<8x32xf32, #tpu.memory_space<vmem>>, vector<8x8xf32>
    tpu.vector_store %arg8[%c0_25, %c16], %72 {strides = array<i32>} : memref<8x32xf32, #tpu.memory_space<vmem>>, vector<8x8xf32>,
    %74 = vector.extract_strided_slice %6 {offsets = [0, 24], sizes = [8, 8], strides = [1, 1]} : vector<8x96xf32> to vector<8x8xf32>
    %75 = vector.shape_cast %74 : vector<8x8xf32> to vector<1x8x8xf32>
    %76 = vector.extract_strided_slice %6 {offsets = [0, 56], sizes = [8, 8], strides = [1, 1]} : vector<8x96xf32> to vector<8x8xf32>
    %77 = vector.shape_cast %76 : vector<8x8xf32> to vector<1x8x8xf32>
    %78 = vector.extract_strided_slice %6 {offsets = [0, 88], sizes = [8, 8], strides = [1, 1]} : vector<8x96xf32> to vector<8x8xf32>
    %79 = vector.shape_cast %78 : vector<8x8xf32> to vector<1x8x8xf32>
    "tpu.trace_start"() <{level = 10 : i32, message = "btd,bsd->bts"}> : () -> ()
    %cst_26 = arith.constant dense<0.000000e+00> : vector<1x8x8xf32>
    %80 = tpu.matmul %75, %77, %cst_26 {dimension_numbers = #tpu.dot_dimension_numbers<[2], [2], [1], [1], [0, 0, 0, 1, 1, 1], [0], [0]>} : vector<1x8x8xf32>, vector<1x8x8xf32>, vector<1x8x8xf32> -> vector<1x8x8xf32>
    "tpu.trace_stop"() : () -> ()
    %cst_27 = arith.constant dense<0xFF800000> : vector<1x8xf32>
    %81 = vector.multi_reduction <maximumf>, %80, %cst_27 [2] : vector<1x8x8xf32> to vector<1x8xf32>
    %82 = vector.shape_cast %81 : vector<1x8xf32> to vector<1x8x1xf32>
    %83 = vector.broadcast %82 : vector<1x8x1xf32> to vector<1x8x8xf32>
    %84 = arith.subf %80, %83 : vector<1x8x8xf32>
    %85 = math.exp %84 : vector<1x8x8xf32>
    %cst_28 = arith.constant dense<0.000000e+00> : vector<1x8xf32>
    %86 = vector.multi_reduction <add>, %85, %cst_28 [2] : vector<1x8x8xf32> to vector<1x8xf32>
    %87 = vector.shape_cast %86 : vector<1x8xf32> to vector<1x8x1xf32>
    %cst_29 = arith.constant 1.000000e+00 : f32
    %88 = vector.broadcast %cst_29 : f32 to vector<1x8x1xf32>
    %89 = arith.divf %88, %87 : vector<1x8x1xf32>
    %90 = vector.broadcast %89 : vector<1x8x1xf32> to vector<1x8x8xf32>
    %91 = arith.mulf %85, %90 : vector<1x8x8xf32>
    %92 = arith.addf %70, %91 : vector<1x8x8xf32>
    "tpu.trace_start"() <{level = 10 : i32, message = "bts,bsd->btd"}> : () -> ()
    %cst_30 = arith.constant dense<0.000000e+00> : vector<1x8x8xf32>
    %93 = tpu.matmul %91, %79, %cst_30 {dimension_numbers = #tpu.dot_dimension_numbers<[2], [1], [1], [2], [0, 0, 0, 1, 1, 2], [0], [0]>} : vector<1x8x8xf32>, vector<1x8x8xf32>, vector<1x8x8xf32> -> vector<1x8x8xf32>
    "tpu.trace_stop"() : () -> ()
    %94 = vector.shape_cast %93 : vector<1x8x8xf32> to vector<8x8xf32>
    %c0_31 = arith.constant 0 : index
    %c24 = arith.constant 24 : index
    %95 = vector.load %arg8[%c0_31, %c24] : memref<8x32xf32, #tpu.memory_space<vmem>>, vector<8x8xf32>
    tpu.vector_store %arg8[%c0_31, %c24], %94 {strides = array<i32>} : memref<8x32xf32, #tpu.memory_space<vmem>>, vector<8x8xf32>,
    %cst_32 = arith.constant 2.500000e-01 : f32
    %96 = vector.broadcast %cst_32 : f32 to vector<1x8x8xf32>
    %97 = arith.mulf %92, %96 : vector<1x8x8xf32>
    %c0_33 = arith.constant 0 : index
    %c0_34 = arith.constant 0 : index
    %c0_35 = arith.constant 0 : index
    %98 = vector.load %arg7[%c0_33, %c0_34, %c0_35] : memref<1x8x8xf32, #tpu.memory_space<vmem>>, vector<1x8x8xf32>
    tpu.vector_store %arg7[%c0_33, %c0_34, %c0_35], %97 {strides = array<i32>} : memref<1x8x8xf32, #tpu.memory_space<vmem>>, vector<1x8x8xf32>,
    %c0_36 = arith.constant 0 : index
    %c0_37 = arith.constant 0 : index
    %99 = vector.load %arg8[%c0_36, %c0_37] : memref<8x32xf32, #tpu.memory_space<vmem>>, vector<8x32xf32>
    %c0_38 = arith.constant 0 : index
    %c0_39 = arith.constant 0 : index
    %100 = vector.load %arg4[%c0_38, %c0_39] : memref<32x32xf32, #tpu.memory_space<vmem>>, vector<32x32xf32>
    %cst_40 = arith.constant dense<0.000000e+00> : vector<8x32xf32>
    %101 = tpu.matmul %99, %100, %cst_40 {dimension_numbers = #tpu.dot_dimension_numbers<[1], [0], [0], [1], [0, 0, 1, 1], [], []>} : vector<8x32xf32>, vector<32x32xf32>, vector<8x32xf32> -> vector<8x32xf32>
    %c0_41 = arith.constant 0 : index
    %c0_42 = arith.constant 0 : index
    %102 = vector.load %arg5[%c0_41, %c0_42] : memref<1x32xf32, #tpu.memory_space<vmem>>, vector<1x32xf32>
    %103 = vector.broadcast %102 : vector<1x32xf32> to vector<8x32xf32>
    %104 = arith.addf %101, %103 : vector<8x32xf32>
    %105 = vector.shape_cast %104 : vector<8x32xf32> to vector<1x8x32xf32>
    %c0_43 = arith.constant 0 : index
    %c0_44 = arith.constant 0 : index
    %c0_45 = arith.constant 0 : index
    %106 = vector.load %arg6[%c0_43, %c0_44, %c0_45] : memref<1x8x32xf32, #tpu.memory_space<vmem>>, vector<1x8x32xf32>
    tpu.vector_store %arg6[%c0_43, %c0_44, %c0_45], %105 {strides = array<i32>} : memref<1x8x32xf32, #tpu.memory_space<vmem>>, vector<1x8x32xf32>,
    return
  }
  func.func @transform_0(%arg0: i32) -> (i32, i32, i32) {
    %c0_i32 = arith.constant 0 : i32
    %c0_i32_0 = arith.constant 0 : i32
    %c0_i32_1 = arith.constant 0 : i32
    return %arg0, %c0_i32, %c0_i32_0 : i32, i32, i32
  }
  func.func @transform_1(%arg0: i32) -> (i32, i32) {
    %c0_i32 = arith.constant 0 : i32
    %c0_i32_0 = arith.constant 0 : i32
    %c0_i32_1 = arith.constant 0 : i32
    return %c0_i32, %c0_i32_0 : i32, i32
  }
  func.func @transform_2(%arg0: i32) -> (i32, i32) {
    %c0_i32 = arith.constant 0 : i32
    %c0_i32_0 = arith.constant 0 : i32
    %c0_i32_1 = arith.constant 0 : i32
    return %c0_i32, %c0_i32_0 : i32, i32
  }
  func.func @transform_3(%arg0: i32) -> (i32, i32) {
    %c0_i32 = arith.constant 0 : i32
    %c0_i32_0 = arith.constant 0 : i32
    %c0_i32_1 = arith.constant 0 : i32
    return %c0_i32, %c0_i32_0 : i32, i32
  }
  func.func @transform_4(%arg0: i32) -> (i32, i32) {
    %c0_i32 = arith.constant 0 : i32
    %c0_i32_0 = arith.constant 0 : i32
    %c0_i32_1 = arith.constant 0 : i32
    return %c0_i32, %c0_i32_0 : i32, i32
  }
  func.func @transform_5(%arg0: i32) -> (i32, i32, i32) {
    %c0_i32 = arith.constant 0 : i32
    %c0_i32_0 = arith.constant 0 : i32
    %c0_i32_1 = arith.constant 0 : i32
    return %arg0, %c0_i32, %c0_i32_0 : i32, i32, i32
  }
  func.func @transform_6(%arg0: i32) -> (i32, i32, i32) {
    %c0_i32 = arith.constant 0 : i32
    %c0_i32_0 = arith.constant 0 : i32
    %c0_i32_1 = arith.constant 0 : i32
    return %arg0, %c0_i32, %c0_i32_0 : i32, i32, i32
  }
}

module attributes {stable_mosaic.version = 11 : i64} {
  func.func @_fused_mha_kernel(%arg0: i32, %arg1: memref<1x8x32xf32, #tpu.memory_space<vmem>>, %arg2: memref<32x96xf32, #tpu.memory_space<vmem>>, %arg3: memref<1x96xf32, #tpu.memory_space<vmem>>, %arg4: memref<32x32xf32, #tpu.memory_space<vmem>>, %arg5: memref<1x32xf32, #tpu.memory_space<vmem>>, %arg6: memref<1x8x32xf32, #tpu.memory_space<vmem>>, %arg7: memref<1x8x8xf32, #tpu.memory_space<vmem>>, %arg8: memref<8x32xf32, #tpu.memory_space<vmem>>) attributes {dimension_semantics = [#tpu.dimension_semantics<parallel>], iteration_bounds = array<i64: 2>, scalar_prefetch = 0 : i64, scratch_operands = 1 : i64, tpu.core_type = #tpu.core_type<tc>, window_params = [{transform_indices = @transform_0, window_bounds = array<i64: 1, 8, 32>}, {pipeline_mode = #tpu.pipeline_mode<synchronous>, transform_indices = @transform_1, window_bounds = array<i64: 32, 96>}, {pipeline_mode = #tpu.pipeline_mode<synchronous>, transform_indices = @transform_2, window_bounds = array<i64: 1, 96>}, {pipeline_mode = #tpu.pipeline_mode<synchronous>, transform_indices = @transform_3, window_bounds = array<i64: 32, 32>}, {pipeline_mode = #tpu.pipeline_mode<synchronous>, transform_indices = @transform_4, window_bounds = array<i64: 1, 32>}, {transform_indices = @transform_5, window_bounds = array<i64: 1, 8, 32>}, {transform_indices = @transform_6, window_bounds = array<i64: 1, 8, 8>}]} {
    %c0 = arith.constant 0 : index
    %c0_0 = arith.constant 0 : index
    %c0_1 = arith.constant 0 : index
    %0 = vector.load %arg1[%c0, %c0_0, %c0_1] : memref<1x8x32xf32, #tpu.memory_space<vmem>>, vector<1x8x32xf32>
    %1 = vector.shape_cast %0 : vector<1x8x32xf32> to vector<8x32xf32>
    %c0_2 = arith.constant 0 : index
    %c0_3 = arith.constant 0 : index
    %2 = vector.load %arg2[%c0_2, %c0_3] : memref<32x96xf32, #tpu.memory_space<vmem>>, vector<32x96xf32>
    %cst = arith.constant dense<0.000000e+00> : vector<8x96xf32>
    %3 = tpu.matmul %1, %2, %cst {dimension_numbers = #tpu.dot_dimension_numbers<[1], [0], [0], [1], [0, 0, 1, 1], [], []>} : vector<8x32xf32>, vector<32x96xf32>, vector<8x96xf32> -> vector<8x96xf32>
    %c0_4 = arith.constant 0 : index
    %c0_5 = arith.constant 0 : index
    %4 = vector.load %arg3[%c0_4, %c0_5] : memref<1x96xf32, #tpu.memory_space<vmem>>, vector<1x96xf32>
    %5 = vector.broadcast %4 : vector<1x96xf32> to vector<8x96xf32>
    %6 = arith.addf %3, %5 : vector<8x96xf32>
    %cst_6 = arith.constant 0.000000e+00 : f32
    %7 = vector.broadcast %cst_6 : f32 to vector<1x8x8xf32>
    %8 = vector.extract_strided_slice %6 {offsets = [0, 0], sizes = [8, 8], strides = [1, 1]} : vector<8x96xf32> to vector<8x8xf32>
    %9 = vector.shape_cast %8 : vector<8x8xf32> to vector<1x8x8xf32>
    %10 = vector.extract_strided_slice %6 {offsets = [0, 32], sizes = [8, 8], strides = [1, 1]} : vector<8x96xf32> to vector<8x8xf32>
    %11 = vector.shape_cast %10 : vector<8x8xf32> to vector<1x8x8xf32>
    %12 = vector.extract_strided_slice %6 {offsets = [0, 64], sizes = [8, 8], strides = [1, 1]} : vector<8x96xf32> to vector<8x8xf32>
    %13 = vector.shape_cast %12 : vector<8x8xf32> to vector<1x8x8xf32>
    "tpu.trace_start"() <{level = 10 : i32, message = "btd,bsd->bts"}> : () -> ()
    %cst_7 = arith.constant dense<0.000000e+00> : vector<1x8x8xf32>
    %14 = tpu.matmul %9, %11, %cst_7 {dimension_numbers = #tpu.dot_dimension_numbers<[2], [2], [1], [1], [0, 0, 0, 1, 1, 1], [0], [0]>} : vector<1x8x8xf32>, vector<1x8x8xf32>, vector<1x8x8xf32> -> vector<1x8x8xf32>
    "tpu.trace_stop"() : () -> ()
    %cst_8 = arith.constant dense<0xFF800000> : vector<1x8xf32>
    %15 = vector.multi_reduction <maximumf>, %14, %cst_8 [2] : vector<1x8x8xf32> to vector<1x8xf32>
    %16 = vector.shape_cast %15 : vector<1x8xf32> to vector<1x8x1xf32>
    %17 = vector.broadcast %16 : vector<1x8x1xf32> to vector<1x8x8xf32>
    %18 = arith.subf %14, %17 : vector<1x8x8xf32>
    %19 = math.exp %18 : vector<1x8x8xf32>
    %cst_9 = arith.constant dense<0.000000e+00> : vector<1x8xf32>
    %20 = vector.multi_reduction <add>, %19, %cst_9 [2] : vector<1x8x8xf32> to vector<1x8xf32>
    %21 = vector.shape_cast %20 : vector<1x8xf32> to vector<1x8x1xf32>
    %cst_10 = arith.constant 1.000000e+00 : f32
    %22 = vector.broadcast %cst_10 : f32 to vector<1x8x1xf32>
    %23 = arith.divf %22, %21 : vector<1x8x1xf32>
    %24 = vector.broadcast %23 : vector<1x8x1xf32> to vector<1x8x8xf32>
    %25 = arith.mulf %19, %24 : vector<1x8x8xf32>
    %26 = arith.addf %7, %25 : vector<1x8x8xf32>
    "tpu.trace_start"() <{level = 10 : i32, message = "bts,bsd->btd"}> : () -> ()
    %cst_11 = arith.constant dense<0.000000e+00> : vector<1x8x8xf32>
    %27 = tpu.matmul %25, %13, %cst_11 {dimension_numbers = #tpu.dot_dimension_numbers<[2], [1], [1], [2], [0, 0, 0, 1, 1, 2], [0], [0]>} : vector<1x8x8xf32>, vector<1x8x8xf32>, vector<1x8x8xf32> -> vector<1x8x8xf32>
    "tpu.trace_stop"() : () -> ()
    %28 = vector.shape_cast %27 : vector<1x8x8xf32> to vector<8x8xf32>
    %c0_12 = arith.constant 0 : index
    %c0_13 = arith.constant 0 : index
    %29 = vector.load %arg8[%c0_12, %c0_13] : memref<8x32xf32, #tpu.memory_space<vmem>>, vector<8x8xf32>
    tpu.vector_store %arg8[%c0_12, %c0_13], %28 {strides = array<i32>} : memref<8x32xf32, #tpu.memory_space<vmem>>, vector<8x8xf32>,
    %30 = vector.extract_strided_slice %6 {offsets = [0, 8], sizes = [8, 8], strides = [1, 1]} : vector<8x96xf32> to vector<8x8xf32>
    %31 = vector.shape_cast %30 : vector<8x8xf32> to vector<1x8x8xf32>
    %32 = vector.extract_strided_slice %6 {offsets = [0, 40], sizes = [8, 8], strides = [1, 1]} : vector<8x96xf32> to vector<8x8xf32>
    %33 = vector.shape_cast %32 : vector<8x8xf32> to vector<1x8x8xf32>
    %34 = vector.extract_strided_slice %6 {offsets = [0, 72], sizes = [8, 8], strides = [1, 1]} : vector<8x96xf32> to vector<8x8xf32>
    %35 = vector.shape_cast %34 : vector<8x8xf32> to vector<1x8x8xf32>
    "tpu.trace_start"() <{level = 10 : i32, message = "btd,bsd->bts"}> : () -> ()
    %cst_14 = arith.constant dense<0.000000e+00> : vector<1x8x8xf32>
    %36 = tpu.matmul %31, %33, %cst_14 {dimension_numbers = #tpu.dot_dimension_numbers<[2], [2], [1], [1], [0, 0, 0, 1, 1, 1], [0], [0]>} : vector<1x8x8xf32>, vector<1x8x8xf32>, vector<1x8x8xf32> -> vector<1x8x8xf32>
    "tpu.trace_stop"() : () -> ()
    %cst_15 = arith.constant dense<0xFF800000> : vector<1x8xf32>
    %37 = vector.multi_reduction <maximumf>, %36, %cst_15 [2] : vector<1x8x8xf32> to vector<1x8xf32>
    %38 = vector.shape_cast %37 : vector<1x8xf32> to vector<1x8x1xf32>
    %39 = vector.broadcast %38 : vector<1x8x1xf32> to vector<1x8x8xf32>
    %40 = arith.subf %36, %39 : vector<1x8x8xf32>
    %41 = math.exp %40 : vector<1x8x8xf32>
    %cst_16 = arith.constant dense<0.000000e+00> : vector<1x8xf32>
    %42 = vector.multi_reduction <add>, %41, %cst_16 [2] : vector<1x8x8xf32> to vector<1x8xf32>
    %43 = vector.shape_cast %42 : vector<1x8xf32> to vector<1x8x1xf32>
    %cst_17 = arith.constant 1.000000e+00 : f32
    %44 = vector.broadcast %cst_17 : f32 to vector<1x8x1xf32>
    %45 = arith.divf %44, %43 : vector<1x8x1xf32>
    %46 = vector.broadcast %45 : vector<1x8x1xf32> to vector<1x8x8xf32>
    %47 = arith.mulf %41, %46 : vector<1x8x8xf32>
    %48 = arith.addf %26, %47 : vector<1x8x8xf32>
    "tpu.trace_start"() <{level = 10 : i32, message = "bts,bsd->btd"}> : () -> ()
    %cst_18 = arith.constant dense<0.000000e+00> : vector<1x8x8xf32>
    %49 = tpu.matmul %47, %35, %cst_18 {dimension_numbers = #tpu.dot_dimension_numbers<[2], [1], [1], [2], [0, 0, 0, 1, 1, 2], [0], [0]>} : vector<1x8x8xf32>, vector<1x8x8xf32>, vector<1x8x8xf32> -> vector<1x8x8xf32>
    "tpu.trace_stop"() : () -> ()
    %50 = vector.shape_cast %49 : vector<1x8x8xf32> to vector<8x8xf32>
    %c0_19 = arith.constant 0 : index
    %c8 = arith.constant 8 : index
    %51 = vector.load %arg8[%c0_19, %c8] : memref<8x32xf32, #tpu.memory_space<vmem>>, vector<8x8xf32>
    tpu.vector_store %arg8[%c0_19, %c8], %50 {strides = array<i32>} : memref<8x32xf32, #tpu.memory_space<vmem>>, vector<8x8xf32>,
    %52 = vector.extract_strided_slice %6 {offsets = [0, 16], sizes = [8, 8], strides = [1, 1]} : vector<8x96xf32> to vector<8x8xf32>
    %53 = vector.shape_cast %52 : vector<8x8xf32> to vector<1x8x8xf32>
    %54 = vector.extract_strided_slice %6 {offsets = [0, 48], sizes = [8, 8], strides = [1, 1]} : vector<8x96xf32> to vector<8x8xf32>
    %55 = vector.shape_cast %54 : vector<8x8xf32> to vector<1x8x8xf32>
    %56 = vector.extract_strided_slice %6 {offsets = [0, 80], sizes = [8, 8], strides = [1, 1]} : vector<8x96xf32> to vector<8x8xf32>
    %57 = vector.shape_cast %56 : vector<8x8xf32> to vector<1x8x8xf32>
    "tpu.trace_start"() <{level = 10 : i32, message = "btd,bsd->bts"}> : () -> ()
    %cst_20 = arith.constant dense<0.000000e+00> : vector<1x8x8xf32>
    %58 = tpu.matmul %53, %55, %cst_20 {dimension_numbers = #tpu.dot_dimension_numbers<[2], [2], [1], [1], [0, 0, 0, 1, 1, 1], [0], [0]>} : vector<1x8x8xf32>, vector<1x8x8xf32>, vector<1x8x8xf32> -> vector<1x8x8xf32>
    "tpu.trace_stop"() : () -> ()
    %cst_21 = arith.constant dense<0xFF800000> : vector<1x8xf32>
    %59 = vector.multi_reduction <maximumf>, %58, %cst_21 [2] : vector<1x8x8xf32> to vector<1x8xf32>
    %60 = vector.shape_cast %59 : vector<1x8xf32> to vector<1x8x1xf32>
    %61 = vector.broadcast %60 : vector<1x8x1xf32> to vector<1x8x8xf32>
    %62 = arith.subf %58, %61 : vector<1x8x8xf32>
    %63 = math.exp %62 : vector<1x8x8xf32>
    %cst_22 = arith.constant dense<0.000000e+00> : vector<1x8xf32>
    %64 = vector.multi_reduction <add>, %63, %cst_22 [2] : vector<1x8x8xf32> to vector<1x8xf32>
    %65 = vector.shape_cast %64 : vector<1x8xf32> to vector<1x8x1xf32>
    %cst_23 = arith.constant 1.000000e+00 : f32
    %66 = vector.broadcast %cst_23 : f32 to vector<1x8x1xf32>
    %67 = arith.divf %66, %65 : vector<1x8x1xf32>
    %68 = vector.broadcast %67 : vector<1x8x1xf32> to vector<1x8x8xf32>
    %69 = arith.mulf %63, %68 : vector<1x8x8xf32>
    %70 = arith.addf %48, %69 : vector<1x8x8xf32>
    "tpu.trace_start"() <{level = 10 : i32, message = "bts,bsd->btd"}> : () -> ()
    %cst_24 = arith.constant dense<0.000000e+00> : vector<1x8x8xf32>
    %71 = tpu.matmul %69, %57, %cst_24 {dimension_numbers = #tpu.dot_dimension_numbers<[2], [1], [1], [2], [0, 0, 0, 1, 1, 2], [0], [0]>} : vector<1x8x8xf32>, vector<1x8x8xf32>, vector<1x8x8xf32> -> vector<1x8x8xf32>
    "tpu.trace_stop"() : () -> ()
    %72 = vector.shape_cast %71 : vector<1x8x8xf32> to vector<8x8xf32>
    %c0_25 = arith.constant 0 : index
    %c16 = arith.constant 16 : index
    %73 = vector.load %arg8[%c0_25, %c16] : memref<8x32xf32, #tpu.memory_space<vmem>>, vector<8x8xf32>
    tpu.vector_store %arg8[%c0_25, %c16], %72 {strides = array<i32>} : memref<8x32xf32, #tpu.memory_space<vmem>>, vector<8x8xf32>,
    %74 = vector.extract_strided_slice %6 {offsets = [0, 24], sizes = [8, 8], strides = [1, 1]} : vector<8x96xf32> to vector<8x8xf32>
    %75 = vector.shape_cast %74 : vector<8x8xf32> to vector<1x8x8xf32>
    %76 = vector.extract_strided_slice %6 {offsets = [0, 56], sizes = [8, 8], strides = [1, 1]} : vector<8x96xf32> to vector<8x8xf32>
    %77 = vector.shape_cast %76 : vector<8x8xf32> to vector<1x8x8xf32>
    %78 = vector.extract_strided_slice %6 {offsets = [0, 88], sizes = [8, 8], strides = [1, 1]} : vector<8x96xf32> to vector<8x8xf32>
    %79 = vector.shape_cast %78 : vector<8x8xf32> to vector<1x8x8xf32>
    "tpu.trace_start"() <{level = 10 : i32, message = "btd,bsd->bts"}> : () -> ()
    %cst_26 = arith.constant dense<0.000000e+00> : vector<1x8x8xf32>
    %80 = tpu.matmul %75, %77, %cst_26 {dimension_numbers = #tpu.dot_dimension_numbers<[2], [2], [1], [1], [0, 0, 0, 1, 1, 1], [0], [0]>} : vector<1x8x8xf32>, vector<1x8x8xf32>, vector<1x8x8xf32> -> vector<1x8x8xf32>
    "tpu.trace_stop"() : () -> ()
    %cst_27 = arith.constant dense<0xFF800000> : vector<1x8xf32>
    %81 = vector.multi_reduction <maximumf>, %80, %cst_27 [2] : vector<1x8x8xf32> to vector<1x8xf32>
    %82 = vector.shape_cast %81 : vector<1x8xf32> to vector<1x8x1xf32>
    %83 = vector.broadcast %82 : vector<1x8x1xf32> to vector<1x8x8xf32>
    %84 = arith.subf %80, %83 : vector<1x8x8xf32>
    %85 = math.exp %84 : vector<1x8x8xf32>
    %cst_28 = arith.constant dense<0.000000e+00> : vector<1x8xf32>
    %86 = vector.multi_reduction <add>, %85, %cst_28 [2] : vector<1x8x8xf32> to vector<1x8xf32>
    %87 = vector.shape_cast %86 : vector<1x8xf32> to vector<1x8x1xf32>
    %cst_29 = arith.constant 1.000000e+00 : f32
    %88 = vector.broadcast %cst_29 : f32 to vector<1x8x1xf32>
    %89 = arith.divf %88, %87 : vector<1x8x1xf32>
    %90 = vector.broadcast %89 : vector<1x8x1xf32> to vector<1x8x8xf32>
    %91 = arith.mulf %85, %90 : vector<1x8x8xf32>
    %92 = arith.addf %70, %91 : vector<1x8x8xf32>
    "tpu.trace_start"() <{level = 10 : i32, message = "bts,bsd->btd"}> : () -> ()
    %cst_30 = arith.constant dense<0.000000e+00> : vector<1x8x8xf32>
    %93 = tpu.matmul %91, %79, %cst_30 {dimension_numbers = #tpu.dot_dimension_numbers<[2], [1], [1], [2], [0, 0, 0, 1, 1, 2], [0], [0]>} : vector<1x8x8xf32>, vector<1x8x8xf32>, vector<1x8x8xf32> -> vector<1x8x8xf32>
    "tpu.trace_stop"() : () -> ()
    %94 = vector.shape_cast %93 : vector<1x8x8xf32> to vector<8x8xf32>
    %c0_31 = arith.constant 0 : index
    %c24 = arith.constant 24 : index
    %95 = vector.load %arg8[%c0_31, %c24] : memref<8x32xf32, #tpu.memory_space<vmem>>, vector<8x8xf32>
    tpu.vector_store %arg8[%c0_31, %c24], %94 {strides = array<i32>} : memref<8x32xf32, #tpu.memory_space<vmem>>, vector<8x8xf32>,
    %cst_32 = arith.constant 2.500000e-01 : f32
    %96 = vector.broadcast %cst_32 : f32 to vector<1x8x8xf32>
    %97 = arith.mulf %92, %96 : vector<1x8x8xf32>
    %c0_33 = arith.constant 0 : index
    %c0_34 = arith.constant 0 : index
    %c0_35 = arith.constant 0 : index
    %98 = vector.load %arg7[%c0_33, %c0_34, %c0_35] : memref<1x8x8xf32, #tpu.memory_space<vmem>>, vector<1x8x8xf32>
    tpu.vector_store %arg7[%c0_33, %c0_34, %c0_35], %97 {strides = array<i32>} : memref<1x8x8xf32, #tpu.memory_space<vmem>>, vector<1x8x8xf32>,
    %c0_36 = arith.constant 0 : index
    %c0_37 = arith.constant 0 : index
    %99 = vector.load %arg8[%c0_36, %c0_37] : memref<8x32xf32, #tpu.memory_space<vmem>>, vector<8x32xf32>
    %c0_38 = arith.constant 0 : index
    %c0_39 = arith.constant 0 : index
    %100 = vector.load %arg4[%c0_38, %c0_39] : memref<32x32xf32, #tpu.memory_space<vmem>>, vector<32x32xf32>
    %cst_40 = arith.constant dense<0.000000e+00> : vector<8x32xf32>
    %101 = tpu.matmul %99, %100, %cst_40 {dimension_numbers = #tpu.dot_dimension_numbers<[1], [0], [0], [1], [0, 0, 1, 1], [], []>} : vector<8x32xf32>, vector<32x32xf32>, vector<8x32xf32> -> vector<8x32xf32>
    %c0_41 = arith.constant 0 : index
    %c0_42 = arith.constant 0 : index
    %102 = vector.load %arg5[%c0_41, %c0_42] : memref<1x32xf32, #tpu.memory_space<vmem>>, vector<1x32xf32>
    %103 = vector.broadcast %102 : vector<1x32xf32> to vector<8x32xf32>
    %104 = arith.addf %101, %103 : vector<8x32xf32>
    %105 = vector.shape_cast %104 : vector<8x32xf32> to vector<1x8x32xf32>
    %c0_43 = arith.constant 0 : index
    %c0_44 = arith.constant 0 : index
    %c0_45 = arith.constant 0 : index
    %106 = vector.load %arg6[%c0_43, %c0_44, %c0_45] : memref<1x8x32xf32, #tpu.memory_space<vmem>>, vector<1x8x32xf32>
    tpu.vector_store %arg6[%c0_43, %c0_44, %c0_45], %105 {strides = array<i32>} : memref<1x8x32xf32, #tpu.memory_space<vmem>>, vector<1x8x32xf32>,
    return
  }
  func.func @transform_0(%arg0: i32) -> (i32, i32, i32) {
    %c0_i32 = arith.constant 0 : i32
    %c0_i32_0 = arith.constant 0 : i32
    %c0_i32_1 = arith.constant 0 : i32
    return %arg0, %c0_i32, %c0_i32_0 : i32, i32, i32
  }
  func.func @transform_1(%arg0: i32) -> (i32, i32) {
    %c0_i32 = arith.constant 0 : i32
    %c0_i32_0 = arith.constant 0 : i32
    %c0_i32_1 = arith.constant 0 : i32
    return %c0_i32, %c0_i32_0 : i32, i32
  }
  func.func @transform_2(%arg0: i32) -> (i32, i32) {
    %c0_i32 = arith.constant 0 : i32
    %c0_i32_0 = arith.constant 0 : i32
    %c0_i32_1 = arith.constant 0 : i32
    return %c0_i32, %c0_i32_0 : i32, i32
  }
  func.func @transform_3(%arg0: i32) -> (i32, i32) {
    %c0_i32 = arith.constant 0 : i32
    %c0_i32_0 = arith.constant 0 : i32
    %c0_i32_1 = arith.constant 0 : i32
    return %c0_i32, %c0_i32_0 : i32, i32
  }
  func.func @transform_4(%arg0: i32) -> (i32, i32) {
    %c0_i32 = arith.constant 0 : i32
    %c0_i32_0 = arith.constant 0 : i32
    %c0_i32_1 = arith.constant 0 : i32
    return %c0_i32, %c0_i32_0 : i32, i32
  }
  func.func @transform_5(%arg0: i32) -> (i32, i32, i32) {
    %c0_i32 = arith.constant 0 : i32
    %c0_i32_0 = arith.constant 0 : i32
    %c0_i32_1 = arith.constant 0 : i32
    return %arg0, %c0_i32, %c0_i32_0 : i32, i32, i32
  }
  func.func @transform_6(%arg0: i32) -> (i32, i32, i32) {
    %c0_i32 = arith.constant 0 : i32
    %c0_i32_0 = arith.constant 0 : i32
    %c0_i32_1 = arith.constant 0 : i32
    return %arg0, %c0_i32, %c0_i32_0 : i32, i32, i32
  }
}

</mosaic_0001>

<bundles_post_ra>
// kernel: tpu_custom_call.1
= control target key start
LH: loop header
LB: loop body
LE: loop exit
PB: predicated region body
PF: predicated region fallthrough
CT: control target
= control target key end

     0   :  { %s1488_s0 = inlined_call_operand.hbm [shape: f32[2,8,32], index: 0, kind: input, shape index: {}]   ;;  %s1489_s1 = inlined_call_operand.hbm [shape: f32[32,96], index: 1, kind: input, shape index: {}]   ;;  %s1490_s2 = inlined_call_operand.vmem [shape: f32[1,96], index: 2, kind: input, shape index: {}]   ;;  %s1491_s3 = inlined_call_operand.hbm [shape: f32[32,32], index: 3, kind: input, shape index: {}]   ;;  %s1492_s4 = inlined_call_operand.vmem [shape: f32[1,32], index: 4, kind: input, shape index: {}]   ;;  %s1493_s5 = inlined_call_operand.hbm [shape: f32[2,8,32], index: 5, kind: output, shape index: {0}]   ;;  %s1494_s6 = inlined_call_operand.hbm [shape: f32[2,8,8], index: 6, kind: output, shape index: {1}]  }
   0x1   :  { %1495 = sst [smem:[#allocation16_spill]] %s1489_s1 }
   0x2   :  { %12 = vsyncpa [#allocation4], 0 }
   0x3   :  { %14 = vsyncpa [#allocation4 + $0x1], 0 }
   0x4   :  { %15 = vsyncpa [#allocation7], 0 }
   0x5   :  { %16 = vsyncpa [#allocation5], 0 }
   0x6   :  { %18 = vsyncpa [#allocation5 + $0x1], 0 }
   0x7   :  { %19 = vsyncpa [#allocation11], 0 }
   0x8   :  { %21 = vsyncpa [#allocation11 + $0x1], 0  ;;  %s1263_s21 = smov 0   ;;  %s1265_s22 = smov 0  }
   0x9   :  { %s1267_s23 = smov 0   ;;  %s1269_s24 = smov 0  }
   0xa LB: > { %s1496_s1 = sld [smem:[#allocation16_spill]]  ;;  %s1287_s28 = sadd.s32 4294967295, %s1208_s24   ;;  %s1208_s24 = sphi %s1269_s24, %s1507_s24   ;;  %s1204_s23 = sphi %s1267_s23, %s1506_s23   ;;  %s1200_s22 = sphi %s1265_s22, %s1505_s22   ;;  %s1196_s21 = sphi %s1263_s21, %s1504_s21  }
   0xb   : > { %p878_p0 = scmp.ge.s32.totalorder %s1208_s24, 1  ;;  %p48_p1 = scmp.eq.s32.totalorder %s1287_s28, 0 }
   0xc   : > { %p194_p2 = scmp.lt.s32.totalorder %s1208_s24, 3  ;;  %s1210_s30 = smov [#allocation6]  }
   0xd   : > { %s207_s7 = sshll.u32 %s1210_s30, 4  ;;  %s222_s10 = sshll.u32 %s1491_s3, 4  ;;  %s208_s7 = int_to_ptr.vmem [resolvable:$true] %s207_s7  ;;  %s223_s10 = int_to_ptr.hbm [resolvable:$true] %s222_s10 }
   0xe   : > { %p1292_p3 = pnand %p878_p0, %p194_p2  ;;  %s1211_s11 = smov [#allocation8]  }
   0xf   : > { %s224_s12 = sshll.u32 %s1211_s11, 4  ;;  %s1212_s13 = smov 128   ;;  %s225_s12 = int_to_ptr.vmem [resolvable:$true] %s224_s12 }
  0x10   : > { %s205_s27 = sshll.u32 %s1496_s1, 4  ;;  %p924_p4 = pneg %p1292_p3  ;;  %s206_s27 = int_to_ptr.hbm [resolvable:$true] %s205_s27 }
  0x11   : > { %s1213_s14 = smov 8   ;;  %s877_s15 = sadd.s32 4294967294, %s1208_s24  }
  0x12   : > { %p925_p6 = pnand %p924_p4, %p48_p1  ;;  %s1306_s16 = sadd.s32 1, %s1208_s24  }
  0x13   : > { %s31_s17 = ssub.s32 %s1208_s24, %s1306_s16  ;;  %s34_s18 = sadd.s32 1, %s1204_s23 }
  0x14   : > { %927 = dma.hbm_to_vmem [thread:$0]  (!%p925_p6), %s206_s27, 512, %s208_s7, [#allocation7], %s1212_s13, %s1212_s13, %s1213_s14  }
  0x15   : > { %930 = dma.hbm_to_vmem [thread:$0]  (!%p925_p6), %s223_s10, 512, %s225_s12, [#allocation7], %s1212_s13, %s1212_s13, %s1213_s14  }
  0x16   : > { %p32_p7 = scmp.eq.s32.totalorder %s31_s17, 0  ;;  %p41_p8 = scmp.ne.s32.totalorder %s1204_s23, %s1200_s22 }
  0x17   : > { %p42_p9 = scmp.eq.s32.totalorder %s1208_s24, 0  ;;  %p47_p10 = scmp.ne.s32.totalorder %s1200_s22, %s1196_s21 }
  0x18   : > { %s1317_s19 = scalar_select %p32_p7, %s1204_s23, %s34_s18  }
  0x19   : > { %p1319_p11 = por %p42_p9, %p41_p8  ;;  %p1325_p12 = por %p48_p1, %p47_p10 }
  0x1a   : > { %p155_p13 = scmp.eq.s32.totalorder %s1287_s28, 1  ;;  %p161_p0 = scmp.eq.s32.totalorder %s877_s15, 1 }
  0x1b   : > { %p944_p2 = scmp.lt.s32.totalorder %s1208_s24, 2  ;;  %s241_s26 = sand.u32 1, %s1204_s23  }
  0x1c   : > { %p1332_p4 = por %p155_p13, %p41_p8  ;;  %p1336_p6 = por %p161_p0, %p47_p10 }
  0x1d   : > { %s882_s7 = sshll.u32 %s241_s26, 3  ;;  %s883_s8 = sshll.u32 %s1208_s24, 3 }
  0x1e   : > { %s249_s11 = scalar_lea.hbm %s1488_s0, %s883_s8  ;;  %s245_s12 = scalar_lea.vmem [#allocation3], %s882_s7 }
  0x1f   : > { %s253_s13 = sshll.u32 %s245_s12, 4  ;;  %s251_s14 = sshll.u32 %s249_s11, 4  ;;  %s254_s13 = int_to_ptr.vmem [resolvable:$true] %s253_s13  ;;  %s252_s14 = int_to_ptr.hbm [resolvable:$true] %s251_s14 }
  0x20   : > { %p1346_p7 = pnand %p944_p2, %p1319_p11  ;;  %s242_s17 = scalar_lea.sflag [#allocation4], %s241_s26 }
  0x21   : > { %s1076_s18 = sshra.s32 %s252_s14, 4  ;;  %s1083_s9 = scalar_lea.hbm %s1488_s0, 16  ;;  %s1077_s18 = int_to_ptr.hbm [resolvable:$true] %s1076_s18 }
  0x22   : > { %s1078_s1 = scalar_lea.hbm %s1077_s18, 8  ;;  %p1080_p9 = pneg %p1346_p7 }
  0x23   : > { %p1079_p8 = scmp.ne.s32.totalorder %s1077_s18, %s1078_s1  ;;  %p1084_p11 = scmp.lt.s32.totalorder %s1077_s18, %s1488_s0 }
  0x24   : > { %p1085_p0 = scmp.lt.s32.totalorder %s1083_s9, %s1078_s1 }
  0x25   : > { %p1081_p10 = pnand %p1080_p9, %p1079_p8 }
  0x26   : > { %p1086_p2 = por %p1085_p0, %p1084_p11 }
  0x27   : > { %p1082_p13 = pneg %p1081_p10 }
  0x29   : > { %p1087_p5 = pnand %p1086_p2, %p1082_p13 }
  0x2b   : > { %1090 = shalt.err (!%p1087_p5)
}
  0x2c   : > { %934 = dma.hbm_to_vmem [thread:$0]  (!%p1346_p7), %s252_s14, 128, %s254_s13, %s242_s17  }
  0x2d   : > { %262 = sbr.rel (%p1292_p3) target bundleno = 1113 (0x459), region = 40  ;;  %s1363_s26 = sand.u32 (!%p1292_p3), 1, %s1200_s22  }
  0x2e   : > { %s1366_s11 = sshll.u32 (!%p1292_p3), %s1363_s26, 3  ;;  %s265_s12 = scalar_lea.sflag (!%p1292_p3), [#allocation4], %s1363_s26 }
  0x2f   : > { %s268_s1 = scalar_lea.vmem (!%p1292_p3), [#allocation3], %s1366_s11 }
  0x32   : > { %1179 = dma.done.wait (%p1325_p12), %s265_s12, 128  }
  0x33   : > { %1181 = vsyncadd (%p1325_p12), %s265_s12, 4294967168 }
  0x34   : > { %1183 = dma.done.wait (%p48_p1), [#allocation7], 1024  }
  0x35   : > { %1185 = vsyncadd (%p48_p1), [#allocation7], 4294966272  ;;  %v317_v0 = vld [vmem:[#allocation6 + $0x18] sm:$0xff]  ;;  %v316_v1 = vld [vmem:[#allocation6 + $0x10] sm:$0xff]  ;;  %vm322_vm0 = vcmask 261120   ;;  %s1214_s13 = smov 72  }
  0x36   : > { %338 = vmatpush.msra.mxu0 %v317_v0  ;;  %v315_v2 = vld [vmem:[#allocation6 + $0x8] sm:$0xff]  ;;  %v314_v3 = vld [vmem:[#allocation6] sm:$0xff]  ;;  %v313_v4 = vld [vmem:[%s268_s1] sm:$0xff]  ;;  %s1215_s14 = smov 120   ;;  %s1216_s15 = smov 96   ;;  %vm349_vm1 = vcmask 64512  }
  0x37   : > { %v998_v5 = vld [vmem:[%s1490_s2] ss:$0 sm:$0xff]  ;;  %s1217_s17 = smov 112   ;;  %s1218_s18 = smov 80  }
  0x38   : > { %339 = vmatpush.msra.mxu0 %v316_v1  ;;  %s1219_s7 = smov 88   ;;  %s1220_s8 = smov 104  }
  0x39   : > { %s1221_s9 = smov 56   ;;  %s1222_s10 = smov 40  }
  0x3a   : > { %340 = vmatpush.msra.mxu0 %v315_v2  ;;  %s1223_s20 = smov 64   ;;  %s1224_s12 = smov 48  }
  0x3b   : > { %s312_s1 = scalar_lea.vmem [#allocation10], %s1366_s11  ;;  %s1225_s29 = smov 8  }
  0x3c   : > { %341 = vmatpush.msra.mxu0 %v314_v3  ;;  %s1226_s25 = smov 24  }
  0x3d   : > { %890 = vmatmul.msk.f32.vlgmr.msra.gmra.mxu0 %vm322_vm0, %v313_v4 }
  0xba   : > { %v343_v6 = vpop.f32.mrf.mxu0 }
  0xbb   : > { %v1382_v7 = vadd.f32 %v998_v5, %v343_v6 }
  0xbd   : > { %601 = vrot.lane.b32.xlu2 %v1382_v7, %s1214_s13  ;;  %427 = vrot.lane.b32.xlu1 %v1382_v7, %s1215_s14  ;;  %s1227_s13 = smov 16   ;;  %s906_s14 = sshll.u32 %s1287_s28, 3 }
  0xbe   : > { %347 = vrot.lane.b32.xlu0 %v1382_v7, %s1216_s15 }
  0xc5   : > { %513 = vrot.lane.b32.xlu2 %v1382_v7, %s1217_s17  ;;  %515 = vrot.lane.b32.xlu1 %v1382_v7, %s1218_s18  ;;  %s750_s18 = scalar_lea.hbm %s1494_s6, %s906_s14 }
  0xc6   : > { %429 = vrot.lane.b32.xlu0 %v1382_v7, %s1219_s7  ;;  %s752_s7 = sshll.u32 %s312_s1, 4  ;;  %s753_s7 = int_to_ptr.vmem [resolvable:$true] %s752_s7 }
  0xce   : > { %599 = vrot.lane.b32.xlu0 %v1382_v7, %s1220_s8  ;;  %s754_s8 = sshll.u32 %s750_s18, 4  ;;  %s755_s8 = int_to_ptr.hbm [resolvable:$true] %s754_s8 }
 0x117   : > { %v602_v8 = vpop.permute.xlu2 %601 }
 0x118   : > { %900 = vmatpush.xpose.msk.msrb.mxu0 %vm349_vm1, %v602_v8 }
 0x11f   : > { %v514_v13 = vpop.permute.xlu2 %513 }
 0x12f   : > { %v428_v9 = vpop.permute.xlu1 %427 }
 0x130   : > { %v348_v10 = vpop.permute.xlu0 %347 }
 0x131   : > { %891 = vmatpush.xpose.msk.msra.mxu1 %vm349_vm1, %v348_v10 }
 0x134   : > { %892 = vmatmul.msk.f32.vlgmr.msra.gmra.mxu1 %vm349_vm1, %v1382_v7 }
 0x137   : > { %v516_v11 = vpop.permute.xlu1 %515 }
 0x138   : > { %v430_v12 = vpop.permute.xlu0 %429  ;;  %897 = vmatpush.xpose.msk.msrb.mxu1 %vm349_vm1, %v516_v11 }
 0x139   : > { %894 = vmatpush.xpose.msk.msra.mxu3 %vm349_vm1, %v430_v12 }
 0x13c   : > { %895 = vmatmul.msk.f32.vlgmr.msra.gmra.mxu3 %vm349_vm1, %v428_v9  ;;  %898 = vmatmul.msk.f32.vlgmr.msrb.gmra.mxu1 %vm349_vm1, %v514_v13 }
 0x140   : > { %v600_v14 = vpop.permute.xlu0 %599 }
 0x141   : > { %901 = vmatmul.msk.f32.vlgmr.msrb.gmra.mxu0 %vm349_vm1, %v600_v14 }
 0x1b1   : > { %v371_v15 = vpop.f32.mrf.mxu1 }
 0x1b2   : > { %v374_v16 = vsel %vm349_vm1, %v371_v15, -inf }
 0x1b3   : > { %375 = vmax.xlane.f32.xlu1 %v374_v16 }
 0x1b9   : > { %v538_v17 = vpop.f32.mrf.mxu1 }
 0x1ba   : > { %v541_v18 = vsel %vm349_vm1, %v538_v17, -inf }
 0x1bb   : > { %542 = vmax.xlane.f32.xlu0 %v541_v18 }
 0x1be   : > { %v624_v21 = vpop.f32.mrf.mxu0 }
 0x1bf   : > { %v452_v19 = vpop.f32.mrf.mxu3  ;;  %v627_v22 = vsel %vm349_vm1, %v624_v21, -inf }
 0x1c0   : > { %v455_v20 = vsel %vm349_vm1, %v452_v19, -inf }
 0x1c1   : > { %456 = vmax.xlane.f32.xlu2 %v455_v20 }
 0x1c9   : > { %628 = vmax.xlane.f32.xlu2 %v627_v22 }
 0x1cf   : > { %481 = vrot.lane.b32.xlu0 %v1382_v7, %s1221_s9  ;;  %s726_s9 = scalar_lea.sflag [#allocation11], %s1363_s26 }
 0x226   : > { %v376_v23 = vpop.xlane.xlu1 %375 }
 0x227   : > { %v377_v24 = vsub.f32 %v371_v15, %v376_v23 }
 0x229   : > { %v378_v25 = vmul.f32 1.442695, %v377_v24 }
 0x22b   : > { %1000 = vpow2.f32 %v378_v25 }
 0x22e   : > { %v543_v26 = vpop.xlane.xlu0 %542 }
 0x22f   : > { %v544_v27 = vsub.f32 %v538_v17, %v543_v26 }
 0x231   : > { %v1001_v28 = vpop.eup %1000  ;;  %v545_v29 = vmul.f32 1.442695, %v544_v27 }
 0x232   : > { %v380_v30 = vsel %vm349_vm1, %v1001_v28, 0.0 }
 0x233   : > { %1002 = vpow2.f32 %v545_v29  ;;  %381 = vadd.xlane.f32.xlu1 %v380_v30 }
 0x234   : > { %v457_v31 = vpop.xlane.xlu2 %456 }
 0x235   : > { %v458_v32 = vsub.f32 %v452_v19, %v457_v31 }
 0x237   : > { %v459_v33 = vmul.f32 1.442695, %v458_v32 }
 0x239   : > { %v1406_v34 = vpop.eup %1002  ;;  %1004 = vpow2.f32 %v459_v33 }
 0x23a   : > { %v547_v35 = vsel %vm349_vm1, %v1406_v34, 0.0 }
 0x23b   : > { %548 = vadd.xlane.f32.xlu0 %v547_v35 }
 0x23c   : > { %v629_v36 = vpop.xlane.xlu2 %628 }
 0x23d   : > { %v630_v37 = vsub.f32 %v624_v21, %v629_v36 }
 0x23f   : > { %v1410_v38 = vpop.eup %1004  ;;  %v631_v39 = vmul.f32 1.442695, %v630_v37 }
 0x240   : > { %v461_v40 = vsel %vm349_vm1, %v1410_v38, 0.0 }
 0x241   : > { %1006 = vpow2.f32 %v631_v39  ;;  %462 = vadd.xlane.f32.xlu2 %v461_v40  ;;  %v482_v43 = vpop.permute.xlu0 %481  ;;  %v691_v40 = vld [vmem:[#allocation8 + $0x18] sm:$0xff] }
 0x242   : > { %711 = vmatpush.msra.mxu1 %v691_v40 }
 0x247   : > { %v1414_v41 = vpop.eup %1006 }
 0x248   : > { %v633_v42 = vsel %vm349_vm1, %v1414_v41, 0.0 }
 0x249   : > { %634 = vadd.xlane.f32.xlu1 %v633_v42  ;;  %v689_v42 = vld [vmem:[#allocation8 + $0x8] sm:$0xff] }
 0x24f   : > { %653 = vrot.lane.b32.xlu0 %v1382_v7, %s1222_s10  ;;  %s1120_s10 = sshra.s32 %s755_s8, 4  ;;  %s1121_s10 = int_to_ptr.hbm [resolvable:$true] %s1120_s10 }
 0x250   : > { %p1127_p12 = scmp.lt.s32.totalorder %s1121_s10, %s1494_s6 }
 0x259   : > { %400 = vrot.lane.b32.xlu2 %v1382_v7, %s1223_s20  ;;  %s1122_s20 = scalar_lea.hbm %s1121_s10, 8 }
 0x25a   : > { %p1123_p1 = scmp.ne.s32.totalorder %s1121_s10, %s1122_s20 }
 0x25c   : > { %p1124_p3 = pnand %p1123_p1, %p1332_p4 }
 0x25e   : > { %p1125_p5 = pneg %p1124_p3 }
 0x262   : > { %567 = vrot.lane.b32.xlu1 %v1382_v7, %s1224_s12 }
 0x2a6   : > { %v382_v44 = vpop.xlane.xlu1 %381 }
 0x2a7   : > { %1008 = vrcp.f32 %v382_v44  ;;  %v394_v50 = vand.u32 2147483648, %v382_v44  ;;  %vm388_vm3 = vweird.f32 %v382_v44  ;;  %v392_v53 = vand.u32 2147483647, %v382_v44 }
 0x2a9   : > { %v395_v57 = vor.u32 1.1754944e-38, %v394_v50  ;;  %vm393_vm5 = vcmp.eq.f32.partialorder %v392_v53, 8.507059e+37 }
 0x2ad   : > { %v1009_v45 = vpop.eup %1008 }
 0x2ae   : > { %v384_v46 = vmul.f32 %v1009_v45, %v382_v44  ;;  %v549_v47 = vpop.xlane.xlu0 %548  ;;  %vm389_vm2 = vweird.f32 %v1009_v45 }
 0x2af   : > { %1010 = vrcp.f32 %v549_v47  ;;  %vm390_vm4 = vmor %vm388_vm3, %vm389_vm2  ;;  %vm555_vm9 = vweird.f32 %v549_v47  ;;  %v561_v10 = vand.u32 2147483648, %v549_v47  ;;  %v559_v12 = vand.u32 2147483647, %v549_v47 }
 0x2b0   : > { %v385_v48 = vsub.f32 1.0, %v384_v46 }
 0x2b1   : > { %v562_v19 = vor.u32 1.1754944e-38, %v561_v10  ;;  %vm560_vm13 = vcmp.eq.f32.partialorder %v559_v12, 8.507059e+37 }
 0x2b2   : > { %v386_v49 = vmul.f32 %v1009_v45, %v385_v48 }
 0x2b4   : > { %v463_v51 = vpop.xlane.xlu2 %462  ;;  %v387_v52 = vadd.f32 %v1009_v45, %v386_v49 }
 0x2b5   : > { %v1011_v54 = vpop.eup %1010  ;;  %1012 = vrcp.f32 %v463_v51  ;;  %v475_v3 = vand.u32 2147483648, %v463_v51  ;;  %v473_v5 = vand.u32 2147483647, %v463_v51  ;;  %vm469_vm8 = vweird.f32 %v463_v51 }
 0x2b6   : > { %v551_v55 = vmul.f32 %v1011_v54, %v549_v47  ;;  %v391_v56 = vsel %vm390_vm4, %v1009_v45, %v387_v52  ;;  %vm556_vm7 = vweird.f32 %v1011_v54  ;;  %vm511_vm4 = vcmask 130112  }
 0x2b7   : > { %v396_v58 = vsel %vm393_vm5, %v395_v57, %v391_v56  ;;  %v476_v11 = vor.u32 1.1754944e-38, %v475_v3  ;;  %vm474_vm11 = vcmp.eq.f32.partialorder %v473_v5, 8.507059e+37  ;;  %vm557_vm12 = vmor %vm555_vm9, %vm556_vm7  ;;  %vm683_vm5 = vcmask 261312  }
 0x2b8   : > { %v552_v59 = vsub.f32 1.0, %v551_v55  ;;  %v398_v0 = vmul.f32 %v1001_v28, %v396_v58 }
 0x2ba   : > { %v553_v1 = vmul.f32 %v1011_v54, %v552_v59 }
 0x2bb   : > { %v1013_v60 = vpop.eup %1012 }
 0x2bc   : > { %v465_v61 = vmul.f32 %v1013_v60, %v463_v51  ;;  %v635_v62 = vpop.xlane.xlu1 %634  ;;  %v401_v63 = vpop.permute.xlu2 %400  ;;  %vm470_vm6 = vweird.f32 %v1013_v60  ;;  %v554_v7 = vadd.f32 %v1011_v54, %v553_v1 }
 0x2bd   : > { %1014 = vrcp.f32 %v635_v62  ;;  %421 = vmatpush.msra.mxu2 %v401_v63  ;;  %vm471_vm10 = vmor %vm469_vm8, %vm470_vm6  ;;  %v647_v20 = vand.u32 2147483648, %v635_v62  ;;  %v645_v22 = vand.u32 2147483647, %v635_v62  ;;  %vm641_vm15 = vweird.f32 %v635_v62 }
 0x2be   : > { %v466_v2 = vsub.f32 1.0, %v465_v61  ;;  %893 = vmatmul.msk.f32.vlgmr.msra.gmra.mxu2 %vm349_vm1, %v398_v0  ;;  %v558_v18 = vsel %vm557_vm12, %v1011_v54, %v554_v7 }
 0x2bf   : > { %502 = vmatpush.msrb.mxu2 %v482_v43  ;;  %v563_v23 = vsel %vm560_vm13, %v562_v19, %v558_v18  ;;  %v648_v26 = vor.u32 1.1754944e-38, %v647_v20  ;;  %vm646_vm3 = vcmp.eq.f32.partialorder %v645_v22, 8.507059e+37  ;;  %v688_v43 = vld [vmem:[#allocation8] sm:$0xff] }
 0x2c0   : > { %v467_v4 = vmul.f32 %v1013_v60, %v466_v2  ;;  %v565_v28 = vmul.f32 %v1406_v34, %v563_v23 }
 0x2c1   : > { %v654_v6 = vpop.permute.xlu0 %653 }
 0x2c2   : > { %v468_v8 = vadd.f32 %v1013_v60, %v467_v4  ;;  %674 = vmatpush.msra.mxu2 %v654_v6 }
 0x2c3   : > { %v1015_v9 = vpop.eup %1014 }
 0x2c4   : > { %v637_v13 = vmul.f32 %v1015_v9, %v635_v62  ;;  %v472_v14 = vsel %vm471_vm10, %v1013_v60, %v468_v8  ;;  %vm642_vm14 = vweird.f32 %v1015_v9 }
 0x2c5   : > { %v477_v15 = vsel %vm474_vm11, %v476_v11, %v472_v14  ;;  %vm643_vm2 = vmor %vm641_vm15, %vm642_vm14 }
 0x2c6   : > { %v638_v16 = vsub.f32 1.0, %v637_v13  ;;  %v479_v17 = vmul.f32 %v1410_v38, %v477_v15 }
 0x2c8   : > { %v639_v21 = vmul.f32 %v1015_v9, %v638_v16  ;;  %896 = vmatmul.msk.f32.vlgmr.msrb.gmra.mxu2 %vm349_vm1, %v479_v17  ;;  %v480_v25 = vadd.f32 %v479_v17, %v398_v0 }
 0x2ca   : > { %v640_v24 = vadd.f32 %v1015_v9, %v639_v21  ;;  %v566_v31 = vadd.f32 %v565_v28, %v480_v25 }
 0x2cc   : > { %v644_v27 = vsel %vm643_vm2, %v1015_v9, %v640_v24 }
 0x2cd   : > { %v649_v29 = vsel %vm646_vm3, %v648_v26, %v644_v27 }
 0x2ce   : > { %v651_v30 = vmul.f32 %v1414_v41, %v649_v29  ;;  %v690_v41 = vld [vmem:[#allocation8 + $0x10] sm:$0xff] }
 0x2cf   : > { %712 = vmatpush.msra.mxu1 %v690_v41 }
 0x2d0   : > { %902 = vmatmul.msk.f32.vlgmr.msra.gmra.mxu2 %vm349_vm1, %v651_v30  ;;  %v652_v32 = vadd.f32 %v651_v30, %v566_v31 }
 0x2d1   : > { %713 = vmatpush.msra.mxu1 %v689_v42 }
 0x2d2   : > { %v685_v33 = vmul.f32 0.25, %v652_v32 }
 0x2d3   : > { %714 = vmatpush.msra.mxu1 %v688_v43 }
 0x2d4   : > { %v568_v35 = vpop.permute.xlu1 %567  ;;  %686 = vst.msk [vmem:[%s312_s1] sm:$0xff] %vm349_vm1, %v685_v33 }
 0x2d5   : > { %588 = vmatpush.msrb.mxu3 %v568_v35 }
 0x2d6   : > { %899 = vmatmul.msk.f32.vlgmr.msrb.gmra.mxu3 %vm349_vm1, %v565_v28 }
 0x341   : > { %v423_v36 = vpop.f32.mrf.mxu2 }
 0x342   : > { %426 = vst.msk [vmem:[#allocation2] sm:$0xff] %vm349_vm1, %v423_v36  ;;  %vm597_vm1 = vcmask 195712  }
 0x34b   : > { %v504_v34 = vpop.f32.mrf.mxu2 }
 0x34c   : > { %508 = vrot.lane.b32.xlu2 %v504_v34, %s1225_s29  ;;  %s1126_s29 = scalar_lea.hbm %s1494_s6, 16 }
 0x34d   : > { %p1128_p7 = scmp.lt.s32.totalorder %s1126_s29, %s1122_s20 }
 0x34f   : > { %p1129_p8 = por %p1128_p7, %p1127_p12 }
 0x351   : > { %p1130_p9 = pnand %p1129_p8, %p1125_p5 }
 0x353   : > { %v676_v37 = vpop.f32.mrf.mxu2 }
 0x354   : > { %680 = vrot.lane.b32.xlu0 %v676_v37, %s1226_s25 }
 0x359   : > { %v590_v38 = vpop.f32.mrf.mxu3 }
 0x35a   : > { %594 = vrot.lane.b32.xlu1 %v590_v38, %s1227_s13 }
 0x3a6   : > { %v509_v39 = vpop.permute.xlu2 %508 }
 0x3a7   : > { %512 = vst.msk [vmem:[#allocation2] sm:$0xff] %vm511_vm4, %v509_v39 }
 0x3c6   : > { %v681_v45 = vpop.permute.xlu0 %680 }
 0x3cc   : > { %v595_v44 = vpop.permute.xlu1 %594 }
 0x3cd   : > { %598 = vst.msk [vmem:[#allocation2] sm:$0xff] %vm597_vm1, %v595_v44 }
 0x3ce   : > { %684 = vst.msk [vmem:[#allocation2] sm:$0xff] %vm683_vm5, %v681_v45 }
 0x3d5   : > { %v687_v46 = vld [vmem:[#allocation2] sm:$0xff] }
 0x3d6   : > { %903 = vmatmul.msk.f32.vlgmr.msra.gmra.mxu1 %vm322_vm0, %v687_v46 }
 0x3d7   : > { %1133 = shalt.err (!%p1130_p9)
}
 0x3d8   : > { %921 = dma.vmem_to_hbm [thread:$0]  (%p1332_p4), %s753_s7, 128, %s755_s8, %s726_s9   ;;  %v999_v47 = vld [vmem:[%s1492_s4] ss:$0 sm:$0xff] }
 0x3d9   : > { %s736_s17 = scalar_lea.hbm %s1493_s5, %s906_s14  ;;  %s305_s12 = scalar_lea.vmem [#allocation9], %s1366_s11 }
 0x3da   : > { %s738_s10 = sshll.u32 %s305_s12, 4  ;;  %s740_s20 = sshll.u32 %s736_s17, 4  ;;  %s739_s10 = int_to_ptr.vmem [resolvable:$true] %s738_s10  ;;  %s741_s20 = int_to_ptr.hbm [resolvable:$true] %s740_s20 }
 0x3db   : > { %s721_s29 = scalar_lea.sflag [#allocation5], %s1363_s26  ;;  %s1148_s7 = sshra.s32 %s741_s20, 4  ;;  %s1149_s7 = int_to_ptr.hbm [resolvable:$true] %s1148_s7 }
 0x3dc   : > { %s1150_s8 = scalar_lea.hbm %s1149_s7, 8  ;;  %s1154_s11 = scalar_lea.hbm %s1493_s5, 16 }
 0x3dd   : > { %p1151_p10 = scmp.ne.s32.totalorder %s1149_s7, %s1150_s8  ;;  %p1155_p0 = scmp.lt.s32.totalorder %s1149_s7, %s1493_s5 }
 0x3de   : > { %p1156_p2 = scmp.lt.s32.totalorder %s1154_s11, %s1150_s8 }
 0x3df   : > { %p1152_p13 = pnand %p1151_p10, %p1332_p4 }
 0x3e0   : > { %p1157_p1 = por %p1156_p2, %p1155_p0 }
 0x3e1   : > { %p1153_p11 = pneg %p1152_p13 }
 0x3e3   : > { %p1158_p3 = pnand %p1157_p1, %p1153_p11 }
 0x453   : > { %v716_v48 = vpop.f32.mrf.mxu1 }
 0x454   : > { %v717_v49 = vadd.f32 %v999_v47, %v716_v48 }
 0x456   : > { %719 = vst.msk [vmem:[%s305_s12] sm:$0xff] %vm322_vm0, %v717_v49 }
 0x457   : > { %1161 = shalt.err (!%p1158_p3)
}
 0x458   : > { %920 = dma.vmem_to_hbm [thread:$0]  (%p1332_p4), %s739_s10, 128, %s741_s20, %s721_s29  }
 0x459 PF: > { %s766_s26 = sand.u32 1, %s1196_s21   ;;  %p1503_p5 = scmp.ge.s32.totalorder %s1208_s24, 2 }
 0x45a   : > { %s767_s1 = scalar_lea.sflag [#allocation5], %s766_s26 }
 0x45b   : > { %p936_p12 = pnand %p1503_p5, %p1336_p6 }
 0x45d   : > { %p937_p7 = pneg %p936_p12 }
 0x45f   : > { %1187 = dma.done.wait (%p937_p7), %s767_s1, 128  }
 0x460   : > { %1189 = vsyncadd (%p937_p7), %s767_s1, 4294967168  ;;  %s777_s15 = scalar_lea.sflag [#allocation11], %s766_s26 }
 0x461   : > { %1191 = dma.done.wait (%p937_p7), %s777_s15, 128  }
 0x462   : > { %1193 = vsyncadd (%p937_p7), %s777_s15, 4294967168  ;;  %p24_p4 = scmp.ge.s32.totalorder %s1306_s16, 4   ;;  %s1504_s21 = smov %s1200_s22 }
 0x463   : > { %s1505_s22 = smov %s1204_s23  ;;  %s1506_s23 = smov %s1317_s19 }
 0x464   : > { %s1507_s24 = smov %s1306_s16  ;;  %26 = sbr.rel (!%p24_p4) target bundleno = 10 (0xa), region = 110 }
 0x469   :  { %783 = vsyncpa [#allocation4], 1 }
 0x46a   :  { %785 = vsyncpa [#allocation4 + $0x1], 1 }
 0x46b   :  { %786 = vsyncpa [#allocation7], 1 }
 0x46c   :  { %787 = vsyncpa [#allocation5], 1 }
 0x46d   :  { %789 = vsyncpa [#allocation5 + $0x1], 1 }
 0x46e   :  { %790 = vsyncpa [#allocation11], 1 }
 0x46f   :  { %792 = vsyncpa [#allocation11 + $0x1], 1 }

// kernel: tpu_custom_call.1
= control target key start
LH: loop header
LB: loop body
LE: loop exit
PB: predicated region body
PF: predicated region fallthrough
CT: control target
= control target key end

     0   :  { %s1488_s0 = inlined_call_operand.hbm [shape: f32[2,8,32], index: 0, kind: input, shape index: {}]   ;;  %s1489_s1 = inlined_call_operand.hbm [shape: f32[32,96], index: 1, kind: input, shape index: {}]   ;;  %s1490_s2 = inlined_call_operand.vmem [shape: f32[1,96], index: 2, kind: input, shape index: {}]   ;;  %s1491_s3 = inlined_call_operand.hbm [shape: f32[32,32], index: 3, kind: input, shape index: {}]   ;;  %s1492_s4 = inlined_call_operand.vmem [shape: f32[1,32], index: 4, kind: input, shape index: {}]   ;;  %s1493_s5 = inlined_call_operand.hbm [shape: f32[2,8,32], index: 5, kind: output, shape index: {0}]   ;;  %s1494_s6 = inlined_call_operand.hbm [shape: f32[2,8,8], index: 6, kind: output, shape index: {1}]  }
   0x1   :  { %1495 = sst [smem:[#allocation16_spill]] %s1489_s1 }
   0x2   :  { %12 = vsyncpa [#allocation4], 0 }
   0x3   :  { %14 = vsyncpa [#allocation4 + $0x1], 0 }
   0x4   :  { %15 = vsyncpa [#allocation7], 0 }
   0x5   :  { %16 = vsyncpa [#allocation5], 0 }
   0x6   :  { %18 = vsyncpa [#allocation5 + $0x1], 0 }
   0x7   :  { %19 = vsyncpa [#allocation11], 0 }
   0x8   :  { %21 = vsyncpa [#allocation11 + $0x1], 0  ;;  %s1263_s21 = smov 0   ;;  %s1265_s22 = smov 0  }
   0x9   :  { %s1267_s23 = smov 0   ;;  %s1269_s24 = smov 0  }
   0xa LB: > { %s1496_s1 = sld [smem:[#allocation16_spill]]  ;;  %s1287_s28 = sadd.s32 4294967295, %s1208_s24   ;;  %s1208_s24 = sphi %s1269_s24, %s1507_s24   ;;  %s1204_s23 = sphi %s1267_s23, %s1506_s23   ;;  %s1200_s22 = sphi %s1265_s22, %s1505_s22   ;;  %s1196_s21 = sphi %s1263_s21, %s1504_s21  }
   0xb   : > { %p878_p0 = scmp.ge.s32.totalorder %s1208_s24, 1  ;;  %p48_p1 = scmp.eq.s32.totalorder %s1287_s28, 0 }
   0xc   : > { %p194_p2 = scmp.lt.s32.totalorder %s1208_s24, 3  ;;  %s1210_s30 = smov [#allocation6]  }
   0xd   : > { %s207_s7 = sshll.u32 %s1210_s30, 4  ;;  %s222_s10 = sshll.u32 %s1491_s3, 4  ;;  %s208_s7 = int_to_ptr.vmem [resolvable:$true] %s207_s7  ;;  %s223_s10 = int_to_ptr.hbm [resolvable:$true] %s222_s10 }
   0xe   : > { %p1292_p3 = pnand %p878_p0, %p194_p2  ;;  %s1211_s11 = smov [#allocation8]  }
   0xf   : > { %s224_s12 = sshll.u32 %s1211_s11, 4  ;;  %s1212_s13 = smov 128   ;;  %s225_s12 = int_to_ptr.vmem [resolvable:$true] %s224_s12 }
  0x10   : > { %s205_s27 = sshll.u32 %s1496_s1, 4  ;;  %p924_p4 = pneg %p1292_p3  ;;  %s206_s27 = int_to_ptr.hbm [resolvable:$true] %s205_s27 }
  0x11   : > { %s1213_s14 = smov 8   ;;  %s877_s15 = sadd.s32 4294967294, %s1208_s24  }
  0x12   : > { %p925_p6 = pnand %p924_p4, %p48_p1  ;;  %s1306_s16 = sadd.s32 1, %s1208_s24  }
  0x13   : > { %s31_s17 = ssub.s32 %s1208_s24, %s1306_s16  ;;  %s34_s18 = sadd.s32 1, %s1204_s23 }
  0x14   : > { %927 = dma.hbm_to_vmem [thread:$0]  (!%p925_p6), %s206_s27, 512, %s208_s7, [#allocation7], %s1212_s13, %s1212_s13, %s1213_s14  }
  0x15   : > { %930 = dma.hbm_to_vmem [thread:$0]  (!%p925_p6), %s223_s10, 512, %s225_s12, [#allocation7], %s1212_s13, %s1212_s13, %s1213_s14  }
  0x16   : > { %p32_p7 = scmp.eq.s32.totalorder %s31_s17, 0  ;;  %p41_p8 = scmp.ne.s32.totalorder %s1204_s23, %s1200_s22 }
  0x17   : > { %p42_p9 = scmp.eq.s32.totalorder %s1208_s24, 0  ;;  %p47_p10 = scmp.ne.s32.totalorder %s1200_s22, %s1196_s21 }
  0x18   : > { %s1317_s19 = scalar_select %p32_p7, %s1204_s23, %s34_s18  }
  0x19   : > { %p1319_p11 = por %p42_p9, %p41_p8  ;;  %p1325_p12 = por %p48_p1, %p47_p10 }
  0x1a   : > { %p155_p13 = scmp.eq.s32.totalorder %s1287_s28, 1  ;;  %p161_p0 = scmp.eq.s32.totalorder %s877_s15, 1 }
  0x1b   : > { %p944_p2 = scmp.lt.s32.totalorder %s1208_s24, 2  ;;  %s241_s26 = sand.u32 1, %s1204_s23  }
  0x1c   : > { %p1332_p4 = por %p155_p13, %p41_p8  ;;  %p1336_p6 = por %p161_p0, %p47_p10 }
  0x1d   : > { %s882_s7 = sshll.u32 %s241_s26, 3  ;;  %s883_s8 = sshll.u32 %s1208_s24, 3 }
  0x1e   : > { %s249_s11 = scalar_lea.hbm %s1488_s0, %s883_s8  ;;  %s245_s12 = scalar_lea.vmem [#allocation3], %s882_s7 }
  0x1f   : > { %s253_s13 = sshll.u32 %s245_s12, 4  ;;  %s251_s14 = sshll.u32 %s249_s11, 4  ;;  %s254_s13 = int_to_ptr.vmem [resolvable:$true] %s253_s13  ;;  %s252_s14 = int_to_ptr.hbm [resolvable:$true] %s251_s14 }
  0x20   : > { %p1346_p7 = pnand %p944_p2, %p1319_p11  ;;  %s242_s17 = scalar_lea.sflag [#allocation4], %s241_s26 }
  0x21   : > { %s1076_s18 = sshra.s32 %s252_s14, 4  ;;  %s1083_s9 = scalar_lea.hbm %s1488_s0, 16  ;;  %s1077_s18 = int_to_ptr.hbm [resolvable:$true] %s1076_s18 }
  0x22   : > { %s1078_s1 = scalar_lea.hbm %s1077_s18, 8  ;;  %p1080_p9 = pneg %p1346_p7 }
  0x23   : > { %p1079_p8 = scmp.ne.s32.totalorder %s1077_s18, %s1078_s1  ;;  %p1084_p11 = scmp.lt.s32.totalorder %s1077_s18, %s1488_s0 }
  0x24   : > { %p1085_p0 = scmp.lt.s32.totalorder %s1083_s9, %s1078_s1 }
  0x25   : > { %p1081_p10 = pnand %p1080_p9, %p1079_p8 }
  0x26   : > { %p1086_p2 = por %p1085_p0, %p1084_p11 }
  0x27   : > { %p1082_p13 = pneg %p1081_p10 }
  0x29   : > { %p1087_p5 = pnand %p1086_p2, %p1082_p13 }
  0x2b   : > { %1090 = shalt.err (!%p1087_p5)
}
  0x2c   : > { %934 = dma.hbm_to_vmem [thread:$0]  (!%p1346_p7), %s252_s14, 128, %s254_s13, %s242_s17  }
  0x2d   : > { %262 = sbr.rel (%p1292_p3) target bundleno = 1113 (0x459), region = 40  ;;  %s1363_s26 = sand.u32 (!%p1292_p3), 1, %s1200_s22  }
  0x2e   : > { %s1366_s11 = sshll.u32 (!%p1292_p3), %s1363_s26, 3  ;;  %s265_s12 = scalar_lea.sflag (!%p1292_p3), [#allocation4], %s1363_s26 }
  0x2f   : > { %s268_s1 = scalar_lea.vmem (!%p1292_p3), [#allocation3], %s1366_s11 }
  0x32   : > { %1179 = dma.done.wait (%p1325_p12), %s265_s12, 128  }
  0x33   : > { %1181 = vsyncadd (%p1325_p12), %s265_s12, 4294967168 }
  0x34   : > { %1183 = dma.done.wait (%p48_p1), [#allocation7], 1024  }
  0x35   : > { %1185 = vsyncadd (%p48_p1), [#allocation7], 4294966272  ;;  %v317_v0 = vld [vmem:[#allocation6 + $0x18] sm:$0xff]  ;;  %v316_v1 = vld [vmem:[#allocation6 + $0x10] sm:$0xff]  ;;  %vm322_vm0 = vcmask 261120   ;;  %s1214_s13 = smov 72  }
  0x36   : > { %338 = vmatpush.msra.mxu0 %v317_v0  ;;  %v315_v2 = vld [vmem:[#allocation6 + $0x8] sm:$0xff]  ;;  %v314_v3 = vld [vmem:[#allocation6] sm:$0xff]  ;;  %v313_v4 = vld [vmem:[%s268_s1] sm:$0xff]  ;;  %s1215_s14 = smov 120   ;;  %s1216_s15 = smov 96   ;;  %vm349_vm1 = vcmask 64512  }
  0x37   : > { %v998_v5 = vld [vmem:[%s1490_s2] ss:$0 sm:$0xff]  ;;  %s1217_s17 = smov 112   ;;  %s1218_s18 = smov 80  }
  0x38   : > { %339 = vmatpush.msra.mxu0 %v316_v1  ;;  %s1219_s7 = smov 88   ;;  %s1220_s8 = smov 104  }
  0x39   : > { %s1221_s9 = smov 56   ;;  %s1222_s10 = smov 40  }
  0x3a   : > { %340 = vmatpush.msra.mxu0 %v315_v2  ;;  %s1223_s20 = smov 64   ;;  %s1224_s12 = smov 48  }
  0x3b   : > { %s312_s1 = scalar_lea.vmem [#allocation10], %s1366_s11  ;;  %s1225_s29 = smov 8  }
  0x3c   : > { %341 = vmatpush.msra.mxu0 %v314_v3  ;;  %s1226_s25 = smov 24  }
  0x3d   : > { %890 = vmatmul.msk.f32.vlgmr.msra.gmra.mxu0 %vm322_vm0, %v313_v4 }
  0xba   : > { %v343_v6 = vpop.f32.mrf.mxu0 }
  0xbb   : > { %v1382_v7 = vadd.f32 %v998_v5, %v343_v6 }
  0xbd   : > { %601 = vrot.lane.b32.xlu2 %v1382_v7, %s1214_s13  ;;  %427 = vrot.lane.b32.xlu1 %v1382_v7, %s1215_s14  ;;  %s1227_s13 = smov 16   ;;  %s906_s14 = sshll.u32 %s1287_s28, 3 }
  0xbe   : > { %347 = vrot.lane.b32.xlu0 %v1382_v7, %s1216_s15 }
  0xc5   : > { %513 = vrot.lane.b32.xlu2 %v1382_v7, %s1217_s17  ;;  %515 = vrot.lane.b32.xlu1 %v1382_v7, %s1218_s18  ;;  %s750_s18 = scalar_lea.hbm %s1494_s6, %s906_s14 }
  0xc6   : > { %429 = vrot.lane.b32.xlu0 %v1382_v7, %s1219_s7  ;;  %s752_s7 = sshll.u32 %s312_s1, 4  ;;  %s753_s7 = int_to_ptr.vmem [resolvable:$true] %s752_s7 }
  0xce   : > { %599 = vrot.lane.b32.xlu0 %v1382_v7, %s1220_s8  ;;  %s754_s8 = sshll.u32 %s750_s18, 4  ;;  %s755_s8 = int_to_ptr.hbm [resolvable:$true] %s754_s8 }
 0x117   : > { %v602_v8 = vpop.permute.xlu2 %601 }
 0x118   : > { %900 = vmatpush.xpose.msk.msrb.mxu0 %vm349_vm1, %v602_v8 }
 0x11f   : > { %v514_v13 = vpop.permute.xlu2 %513 }
 0x12f   : > { %v428_v9 = vpop.permute.xlu1 %427 }
 0x130   : > { %v348_v10 = vpop.permute.xlu0 %347 }
 0x131   : > { %891 = vmatpush.xpose.msk.msra.mxu1 %vm349_vm1, %v348_v10 }
 0x134   : > { %892 = vmatmul.msk.f32.vlgmr.msra.gmra.mxu1 %vm349_vm1, %v1382_v7 }
 0x137   : > { %v516_v11 = vpop.permute.xlu1 %515 }
 0x138   : > { %v430_v12 = vpop.permute.xlu0 %429  ;;  %897 = vmatpush.xpose.msk.msrb.mxu1 %vm349_vm1, %v516_v11 }
 0x139   : > { %894 = vmatpush.xpose.msk.msra.mxu3 %vm349_vm1, %v430_v12 }
 0x13c   : > { %895 = vmatmul.msk.f32.vlgmr.msra.gmra.mxu3 %vm349_vm1, %v428_v9  ;;  %898 = vmatmul.msk.f32.vlgmr.msrb.gmra.mxu1 %vm349_vm1, %v514_v13 }
 0x140   : > { %v600_v14 = vpop.permute.xlu0 %599 }
 0x141   : > { %901 = vmatmul.msk.f32.vlgmr.msrb.gmra.mxu0 %vm349_vm1, %v600_v14 }
 0x1b1   : > { %v371_v15 = vpop.f32.mrf.mxu1 }
 0x1b2   : > { %v374_v16 = vsel %vm349_vm1, %v371_v15, -inf }
 0x1b3   : > { %375 = vmax.xlane.f32.xlu1 %v374_v16 }
 0x1b9   : > { %v538_v17 = vpop.f32.mrf.mxu1 }
 0x1ba   : > { %v541_v18 = vsel %vm349_vm1, %v538_v17, -inf }
 0x1bb   : > { %542 = vmax.xlane.f32.xlu0 %v541_v18 }
 0x1be   : > { %v624_v21 = vpop.f32.mrf.mxu0 }
 0x1bf   : > { %v452_v19 = vpop.f32.mrf.mxu3  ;;  %v627_v22 = vsel %vm349_vm1, %v624_v21, -inf }
 0x1c0   : > { %v455_v20 = vsel %vm349_vm1, %v452_v19, -inf }
 0x1c1   : > { %456 = vmax.xlane.f32.xlu2 %v455_v20 }
 0x1c9   : > { %628 = vmax.xlane.f32.xlu2 %v627_v22 }
 0x1cf   : > { %481 = vrot.lane.b32.xlu0 %v1382_v7, %s1221_s9  ;;  %s726_s9 = scalar_lea.sflag [#allocation11], %s1363_s26 }
 0x226   : > { %v376_v23 = vpop.xlane.xlu1 %375 }
 0x227   : > { %v377_v24 = vsub.f32 %v371_v15, %v376_v23 }
 0x229   : > { %v378_v25 = vmul.f32 1.442695, %v377_v24 }
 0x22b   : > { %1000 = vpow2.f32 %v378_v25 }
 0x22e   : > { %v543_v26 = vpop.xlane.xlu0 %542 }
 0x22f   : > { %v544_v27 = vsub.f32 %v538_v17, %v543_v26 }
 0x231   : > { %v1001_v28 = vpop.eup %1000  ;;  %v545_v29 = vmul.f32 1.442695, %v544_v27 }
 0x232   : > { %v380_v30 = vsel %vm349_vm1, %v1001_v28, 0.0 }
 0x233   : > { %1002 = vpow2.f32 %v545_v29  ;;  %381 = vadd.xlane.f32.xlu1 %v380_v30 }
 0x234   : > { %v457_v31 = vpop.xlane.xlu2 %456 }
 0x235   : > { %v458_v32 = vsub.f32 %v452_v19, %v457_v31 }
 0x237   : > { %v459_v33 = vmul.f32 1.442695, %v458_v32 }
 0x239   : > { %v1406_v34 = vpop.eup %1002  ;;  %1004 = vpow2.f32 %v459_v33 }
 0x23a   : > { %v547_v35 = vsel %vm349_vm1, %v1406_v34, 0.0 }
 0x23b   : > { %548 = vadd.xlane.f32.xlu0 %v547_v35 }
 0x23c   : > { %v629_v36 = vpop.xlane.xlu2 %628 }
 0x23d   : > { %v630_v37 = vsub.f32 %v624_v21, %v629_v36 }
 0x23f   : > { %v1410_v38 = vpop.eup %1004  ;;  %v631_v39 = vmul.f32 1.442695, %v630_v37 }
 0x240   : > { %v461_v40 = vsel %vm349_vm1, %v1410_v38, 0.0 }
 0x241   : > { %1006 = vpow2.f32 %v631_v39  ;;  %462 = vadd.xlane.f32.xlu2 %v461_v40  ;;  %v482_v43 = vpop.permute.xlu0 %481  ;;  %v691_v40 = vld [vmem:[#allocation8 + $0x18] sm:$0xff] }
 0x242   : > { %711 = vmatpush.msra.mxu1 %v691_v40 }
 0x247   : > { %v1414_v41 = vpop.eup %1006 }
 0x248   : > { %v633_v42 = vsel %vm349_vm1, %v1414_v41, 0.0 }
 0x249   : > { %634 = vadd.xlane.f32.xlu1 %v633_v42  ;;  %v689_v42 = vld [vmem:[#allocation8 + $0x8] sm:$0xff] }
 0x24f   : > { %653 = vrot.lane.b32.xlu0 %v1382_v7, %s1222_s10  ;;  %s1120_s10 = sshra.s32 %s755_s8, 4  ;;  %s1121_s10 = int_to_ptr.hbm [resolvable:$true] %s1120_s10 }
 0x250   : > { %p1127_p12 = scmp.lt.s32.totalorder %s1121_s10, %s1494_s6 }
 0x259   : > { %400 = vrot.lane.b32.xlu2 %v1382_v7, %s1223_s20  ;;  %s1122_s20 = scalar_lea.hbm %s1121_s10, 8 }
 0x25a   : > { %p1123_p1 = scmp.ne.s32.totalorder %s1121_s10, %s1122_s20 }
 0x25c   : > { %p1124_p3 = pnand %p1123_p1, %p1332_p4 }
 0x25e   : > { %p1125_p5 = pneg %p1124_p3 }
 0x262   : > { %567 = vrot.lane.b32.xlu1 %v1382_v7, %s1224_s12 }
 0x2a6   : > { %v382_v44 = vpop.xlane.xlu1 %381 }
 0x2a7   : > { %1008 = vrcp.f32 %v382_v44  ;;  %v394_v50 = vand.u32 2147483648, %v382_v44  ;;  %vm388_vm3 = vweird.f32 %v382_v44  ;;  %v392_v53 = vand.u32 2147483647, %v382_v44 }
 0x2a9   : > { %v395_v57 = vor.u32 1.1754944e-38, %v394_v50  ;;  %vm393_vm5 = vcmp.eq.f32.partialorder %v392_v53, 8.507059e+37 }
 0x2ad   : > { %v1009_v45 = vpop.eup %1008 }
 0x2ae   : > { %v384_v46 = vmul.f32 %v1009_v45, %v382_v44  ;;  %v549_v47 = vpop.xlane.xlu0 %548  ;;  %vm389_vm2 = vweird.f32 %v1009_v45 }
 0x2af   : > { %1010 = vrcp.f32 %v549_v47  ;;  %vm390_vm4 = vmor %vm388_vm3, %vm389_vm2  ;;  %vm555_vm9 = vweird.f32 %v549_v47  ;;  %v561_v10 = vand.u32 2147483648, %v549_v47  ;;  %v559_v12 = vand.u32 2147483647, %v549_v47 }
 0x2b0   : > { %v385_v48 = vsub.f32 1.0, %v384_v46 }
 0x2b1   : > { %v562_v19 = vor.u32 1.1754944e-38, %v561_v10  ;;  %vm560_vm13 = vcmp.eq.f32.partialorder %v559_v12, 8.507059e+37 }
 0x2b2   : > { %v386_v49 = vmul.f32 %v1009_v45, %v385_v48 }
 0x2b4   : > { %v463_v51 = vpop.xlane.xlu2 %462  ;;  %v387_v52 = vadd.f32 %v1009_v45, %v386_v49 }
 0x2b5   : > { %v1011_v54 = vpop.eup %1010  ;;  %1012 = vrcp.f32 %v463_v51  ;;  %v475_v3 = vand.u32 2147483648, %v463_v51  ;;  %v473_v5 = vand.u32 2147483647, %v463_v51  ;;  %vm469_vm8 = vweird.f32 %v463_v51 }
 0x2b6   : > { %v551_v55 = vmul.f32 %v1011_v54, %v549_v47  ;;  %v391_v56 = vsel %vm390_vm4, %v1009_v45, %v387_v52  ;;  %vm556_vm7 = vweird.f32 %v1011_v54  ;;  %vm511_vm4 = vcmask 130112  }
 0x2b7   : > { %v396_v58 = vsel %vm393_vm5, %v395_v57, %v391_v56  ;;  %v476_v11 = vor.u32 1.1754944e-38, %v475_v3  ;;  %vm474_vm11 = vcmp.eq.f32.partialorder %v473_v5, 8.507059e+37  ;;  %vm557_vm12 = vmor %vm555_vm9, %vm556_vm7  ;;  %vm683_vm5 = vcmask 261312  }
 0x2b8   : > { %v552_v59 = vsub.f32 1.0, %v551_v55  ;;  %v398_v0 = vmul.f32 %v1001_v28, %v396_v58 }
 0x2ba   : > { %v553_v1 = vmul.f32 %v1011_v54, %v552_v59 }
 0x2bb   : > { %v1013_v60 = vpop.eup %1012 }
 0x2bc   : > { %v465_v61 = vmul.f32 %v1013_v60, %v463_v51  ;;  %v635_v62 = vpop.xlane.xlu1 %634  ;;  %v401_v63 = vpop.permute.xlu2 %400  ;;  %vm470_vm6 = vweird.f32 %v1013_v60  ;;  %v554_v7 = vadd.f32 %v1011_v54, %v553_v1 }
 0x2bd   : > { %1014 = vrcp.f32 %v635_v62  ;;  %421 = vmatpush.msra.mxu2 %v401_v63  ;;  %vm471_vm10 = vmor %vm469_vm8, %vm470_vm6  ;;  %v647_v20 = vand.u32 2147483648, %v635_v62  ;;  %v645_v22 = vand.u32 2147483647, %v635_v62  ;;  %vm641_vm15 = vweird.f32 %v635_v62 }
 0x2be   : > { %v466_v2 = vsub.f32 1.0, %v465_v61  ;;  %893 = vmatmul.msk.f32.vlgmr.msra.gmra.mxu2 %vm349_vm1, %v398_v0  ;;  %v558_v18 = vsel %vm557_vm12, %v1011_v54, %v554_v7 }
 0x2bf   : > { %502 = vmatpush.msrb.mxu2 %v482_v43  ;;  %v563_v23 = vsel %vm560_vm13, %v562_v19, %v558_v18  ;;  %v648_v26 = vor.u32 1.1754944e-38, %v647_v20  ;;  %vm646_vm3 = vcmp.eq.f32.partialorder %v645_v22, 8.507059e+37  ;;  %v688_v43 = vld [vmem:[#allocation8] sm:$0xff] }
 0x2c0   : > { %v467_v4 = vmul.f32 %v1013_v60, %v466_v2  ;;  %v565_v28 = vmul.f32 %v1406_v34, %v563_v23 }
 0x2c1   : > { %v654_v6 = vpop.permute.xlu0 %653 }
 0x2c2   : > { %v468_v8 = vadd.f32 %v1013_v60, %v467_v4  ;;  %674 = vmatpush.msra.mxu2 %v654_v6 }
 0x2c3   : > { %v1015_v9 = vpop.eup %1014 }
 0x2c4   : > { %v637_v13 = vmul.f32 %v1015_v9, %v635_v62  ;;  %v472_v14 = vsel %vm471_vm10, %v1013_v60, %v468_v8  ;;  %vm642_vm14 = vweird.f32 %v1015_v9 }
 0x2c5   : > { %v477_v15 = vsel %vm474_vm11, %v476_v11, %v472_v14  ;;  %vm643_vm2 = vmor %vm641_vm15, %vm642_vm14 }
 0x2c6   : > { %v638_v16 = vsub.f32 1.0, %v637_v13  ;;  %v479_v17 = vmul.f32 %v1410_v38, %v477_v15 }
 0x2c8   : > { %v639_v21 = vmul.f32 %v1015_v9, %v638_v16  ;;  %896 = vmatmul.msk.f32.vlgmr.msrb.gmra.mxu2 %vm349_vm1, %v479_v17  ;;  %v480_v25 = vadd.f32 %v479_v17, %v398_v0 }
 0x2ca   : > { %v640_v24 = vadd.f32 %v1015_v9, %v639_v21  ;;  %v566_v31 = vadd.f32 %v565_v28, %v480_v25 }
 0x2cc   : > { %v644_v27 = vsel %vm643_vm2, %v1015_v9, %v640_v24 }
 0x2cd   : > { %v649_v29 = vsel %vm646_vm3, %v648_v26, %v644_v27 }
 0x2ce   : > { %v651_v30 = vmul.f32 %v1414_v41, %v649_v29  ;;  %v690_v41 = vld [vmem:[#allocation8 + $0x10] sm:$0xff] }
 0x2cf   : > { %712 = vmatpush.msra.mxu1 %v690_v41 }
 0x2d0   : > { %902 = vmatmul.msk.f32.vlgmr.msra.gmra.mxu2 %vm349_vm1, %v651_v30  ;;  %v652_v32 = vadd.f32 %v651_v30, %v566_v31 }
 0x2d1   : > { %713 = vmatpush.msra.mxu1 %v689_v42 }
 0x2d2   : > { %v685_v33 = vmul.f32 0.25, %v652_v32 }
 0x2d3   : > { %714 = vmatpush.msra.mxu1 %v688_v43 }
 0x2d4   : > { %v568_v35 = vpop.permute.xlu1 %567  ;;  %686 = vst.msk [vmem:[%s312_s1] sm:$0xff] %vm349_vm1, %v685_v33 }
 0x2d5   : > { %588 = vmatpush.msrb.mxu3 %v568_v35 }
 0x2d6   : > { %899 = vmatmul.msk.f32.vlgmr.msrb.gmra.mxu3 %vm349_vm1, %v565_v28 }
 0x341   : > { %v423_v36 = vpop.f32.mrf.mxu2 }
 0x342   : > { %426 = vst.msk [vmem:[#allocation2] sm:$0xff] %vm349_vm1, %v423_v36  ;;  %vm597_vm1 = vcmask 195712  }
 0x34b   : > { %v504_v34 = vpop.f32.mrf.mxu2 }
 0x34c   : > { %508 = vrot.lane.b32.xlu2 %v504_v34, %s1225_s29  ;;  %s1126_s29 = scalar_lea.hbm %s1494_s6, 16 }
 0x34d   : > { %p1128_p7 = scmp.lt.s32.totalorder %s1126_s29, %s1122_s20 }
 0x34f   : > { %p1129_p8 = por %p1128_p7, %p1127_p12 }
 0x351   : > { %p1130_p9 = pnand %p1129_p8, %p1125_p5 }
 0x353   : > { %v676_v37 = vpop.f32.mrf.mxu2 }
 0x354   : > { %680 = vrot.lane.b32.xlu0 %v676_v37, %s1226_s25 }
 0x359   : > { %v590_v38 = vpop.f32.mrf.mxu3 }
 0x35a   : > { %594 = vrot.lane.b32.xlu1 %v590_v38, %s1227_s13 }
 0x3a6   : > { %v509_v39 = vpop.permute.xlu2 %508 }
 0x3a7   : > { %512 = vst.msk [vmem:[#allocation2] sm:$0xff] %vm511_vm4, %v509_v39 }
 0x3c6   : > { %v681_v45 = vpop.permute.xlu0 %680 }
 0x3cc   : > { %v595_v44 = vpop.permute.xlu1 %594 }
 0x3cd   : > { %598 = vst.msk [vmem:[#allocation2] sm:$0xff] %vm597_vm1, %v595_v44 }
 0x3ce   : > { %684 = vst.msk [vmem:[#allocation2] sm:$0xff] %vm683_vm5, %v681_v45 }
 0x3d5   : > { %v687_v46 = vld [vmem:[#allocation2] sm:$0xff] }
 0x3d6   : > { %903 = vmatmul.msk.f32.vlgmr.msra.gmra.mxu1 %vm322_vm0, %v687_v46 }
 0x3d7   : > { %1133 = shalt.err (!%p1130_p9)
}
 0x3d8   : > { %921 = dma.vmem_to_hbm [thread:$0]  (%p1332_p4), %s753_s7, 128, %s755_s8, %s726_s9   ;;  %v999_v47 = vld [vmem:[%s1492_s4] ss:$0 sm:$0xff] }
 0x3d9   : > { %s736_s17 = scalar_lea.hbm %s1493_s5, %s906_s14  ;;  %s305_s12 = scalar_lea.vmem [#allocation9], %s1366_s11 }
 0x3da   : > { %s738_s10 = sshll.u32 %s305_s12, 4  ;;  %s740_s20 = sshll.u32 %s736_s17, 4  ;;  %s739_s10 = int_to_ptr.vmem [resolvable:$true] %s738_s10  ;;  %s741_s20 = int_to_ptr.hbm [resolvable:$true] %s740_s20 }
 0x3db   : > { %s721_s29 = scalar_lea.sflag [#allocation5], %s1363_s26  ;;  %s1148_s7 = sshra.s32 %s741_s20, 4  ;;  %s1149_s7 = int_to_ptr.hbm [resolvable:$true] %s1148_s7 }
 0x3dc   : > { %s1150_s8 = scalar_lea.hbm %s1149_s7, 8  ;;  %s1154_s11 = scalar_lea.hbm %s1493_s5, 16 }
 0x3dd   : > { %p1151_p10 = scmp.ne.s32.totalorder %s1149_s7, %s1150_s8  ;;  %p1155_p0 = scmp.lt.s32.totalorder %s1149_s7, %s1493_s5 }
 0x3de   : > { %p1156_p2 = scmp.lt.s32.totalorder %s1154_s11, %s1150_s8 }
 0x3df   : > { %p1152_p13 = pnand %p1151_p10, %p1332_p4 }
 0x3e0   : > { %p1157_p1 = por %p1156_p2, %p1155_p0 }
 0x3e1   : > { %p1153_p11 = pneg %p1152_p13 }
 0x3e3   : > { %p1158_p3 = pnand %p1157_p1, %p1153_p11 }
 0x453   : > { %v716_v48 = vpop.f32.mrf.mxu1 }
 0x454   : > { %v717_v49 = vadd.f32 %v999_v47, %v716_v48 }
 0x456   : > { %719 = vst.msk [vmem:[%s305_s12] sm:$0xff] %vm322_vm0, %v717_v49 }
 0x457   : > { %1161 = shalt.err (!%p1158_p3)
}
 0x458   : > { %920 = dma.vmem_to_hbm [thread:$0]  (%p1332_p4), %s739_s10, 128, %s741_s20, %s721_s29  }
 0x459 PF: > { %s766_s26 = sand.u32 1, %s1196_s21   ;;  %p1503_p5 = scmp.ge.s32.totalorder %s1208_s24, 2 }
 0x45a   : > { %s767_s1 = scalar_lea.sflag [#allocation5], %s766_s26 }
 0x45b   : > { %p936_p12 = pnand %p1503_p5, %p1336_p6 }
 0x45d   : > { %p937_p7 = pneg %p936_p12 }
 0x45f   : > { %1187 = dma.done.wait (%p937_p7), %s767_s1, 128  }
 0x460   : > { %1189 = vsyncadd (%p937_p7), %s767_s1, 4294967168  ;;  %s777_s15 = scalar_lea.sflag [#allocation11], %s766_s26 }
 0x461   : > { %1191 = dma.done.wait (%p937_p7), %s777_s15, 128  }
 0x462   : > { %1193 = vsyncadd (%p937_p7), %s777_s15, 4294967168  ;;  %p24_p4 = scmp.ge.s32.totalorder %s1306_s16, 4   ;;  %s1504_s21 = smov %s1200_s22 }
 0x463   : > { %s1505_s22 = smov %s1204_s23  ;;  %s1506_s23 = smov %s1317_s19 }
 0x464   : > { %s1507_s24 = smov %s1306_s16  ;;  %26 = sbr.rel (!%p24_p4) target bundleno = 10 (0xa), region = 110 }
 0x469   :  { %783 = vsyncpa [#allocation4], 1 }
 0x46a   :  { %785 = vsyncpa [#allocation4 + $0x1], 1 }
 0x46b   :  { %786 = vsyncpa [#allocation7], 1 }
 0x46c   :  { %787 = vsyncpa [#allocation5], 1 }
 0x46d   :  { %789 = vsyncpa [#allocation5 + $0x1], 1 }
 0x46e   :  { %790 = vsyncpa [#allocation11], 1 }
 0x46f   :  { %792 = vsyncpa [#allocation11 + $0x1], 1 }

</bundles_post_ra>
